<compile_context>
chip_gen: v7x
topology: tpu7x:2x2x1
jax: 0.10.0
libtpu: 0.0.40
codegen_flags: <defaults>
</compile_context>

<pallas_src>
import numpy as np
import jax
import jax.numpy as jnp
from jax import lax
from jax.experimental import pallas as pl
from jax.experimental.pallas import tpu as pltpu

EPS = 1e-5


# ------------------------------ fused Pallas kernel ------------------------------ #

def _make_kernel(Cin, P, Cout, stride, has_shortcut):
    f32 = jnp.float32
    bf16 = jnp.bfloat16

    def kernel(xt_ref, g_ref, bn_ref, w1_ref, w2_ref, w3_ref, ws_ref,
               o_ref, stack_ref):

        def bn_relu(v, g, b):
            # Training-mode BN: per-channel (row) batch mean / biased variance
            # over the lane (N*H*W) axis.  rsqrt -> EUP, var = E[x^2] - E[x]^2.
            m = jnp.mean(v, axis=1, keepdims=True)
            var = jnp.mean(v * v, axis=1, keepdims=True) - m * m
            s = g * lax.rsqrt(var + EPS)
            return jnp.maximum(v * s + (b - m * s), 0.0)

        xt = xt_ref[...]                                   # (Cin, M) f32, lane-dense
        g1, b1 = bn_ref[0:Cin, 0:1], bn_ref[0:Cin, 1:2]
        g2, b2 = bn_ref[0:P, 2:3], bn_ref[0:P, 3:4]
        g3, b3 = bn_ref[0:P, 4:5], bn_ref[0:P, 5:6]

        h1 = bn_relu(xt, g1, b1)                           # (Cin, M)
        h1b = h1.astype(bf16)

        # conv1 (1x1): (P, Cin) @ (Cin, M) -> (P, M); spatial dim on MXU lanes.
        out1 = jnp.dot(w1_ref[...], h1b, preferred_element_type=f32)
        h2b = bn_relu(out1, g2, b2).astype(bf16)           # (P, M)

        # conv2 (3x3, stride, pad=1): gather the 9 taps with host-precomputed
        # one-hot matrices (padding validity already folded in), pack them into
        # a (9P, Mo) block and contract with ONE K=9P GEMM.
        for k in range(9):
            tap = jnp.dot(h2b, g_ref[k], preferred_element_type=f32)   # (P, Mo)
            stack_ref[k * P:(k + 1) * P, :] = tap
        out2 = jnp.dot(w2_ref[...], stack_ref[...].astype(bf16),
                       preferred_element_type=f32)         # (P, Mo)

        h3b = bn_relu(out2, g3, b3).astype(bf16)           # (P, Mo)

        # Shortcut branch: 1x1 stride-s conv on relu(bn1(x)) (reuses the
        # centre-tap gather matrix), or the identity.
        if has_shortcut:
            if stride == 1:
                hs = h1b                                   # (Cin, M), M == Mo
            else:
                hs = jnp.dot(h1b, g_ref[4],
                             preferred_element_type=f32).astype(bf16)  # (Cin, Mo)
            shortcut = jnp.dot(ws_ref[...], hs, preferred_element_type=f32)
        else:
            shortcut = xt                                  # Cin == Cout, M == Mo

        # conv3 (1x1) + residual add; lane-dense (Cout, Mo) store.
        o_ref[...] = jnp.dot(w3_ref[...], h3b, preferred_element_type=f32) + shortcut

    return kernel


# --------------------------------- wrapper ---------------------------------------- #

def preact_bottleneck_forward(x_nchw, tw, stride):
    """Fused forward.  x_nchw: (N, Cin, H, W) f32; tw: torch-layout (OIHW) weights."""
    N, Cin, H, W = x_nchw.shape
    P = tw["w1"].shape[0]
    Cout = tw["w3"].shape[0]
    has_shortcut = (stride != 1) or (Cin != Cout)

    M = N * H * W
    Ho = (H + 2 - 3) // stride + 1
    Wo = (W + 2 - 3) // stride + 1
    Mo = N * Ho * Wo
    bf16 = jnp.bfloat16

    # Channel-major, lane-dense input: (Cin, N*H*W).
    xt = jnp.transpose(x_nchw, (1, 0, 2, 3)).reshape(Cin, M).astype(jnp.float32)

    # Host-precomputed one-hot tap-gather matrices (exact integer math).
    # gst[k, j, r] = 1 iff input column j is tap (kh, kw) = (k//3, k%3) of
    # output column r; columns where the tap falls in the zero padding stay 0.
    n_i = np.repeat(np.arange(N), Ho * Wo)
    ho_i = np.tile(np.repeat(np.arange(Ho), Wo), N)
    wo_i = np.tile(np.arange(Wo), N * Ho)
    gst = np.zeros((9, M, Mo), np.float32)
    for k in range(9):
        dh, dw = k // 3 - 1, k % 3 - 1
        hin = stride * ho_i + dh
        win = stride * wo_i + dw
        ok = (hin >= 0) & (hin < H) & (win >= 0) & (win < W)
        src = (n_i * H + hin) * W + win
        gst[k, src[ok], np.arange(Mo)[ok]] = 1.0
    gstack = jnp.asarray(gst, bf16)

    # Weights already in the (C_out, C_in) orientation used by the transposed GEMMs.
    w1t = jnp.asarray(tw["w1"][:, :, 0, 0], bf16)                             # (P, Cin)
    w2p = jnp.asarray(
        np.transpose(np.asarray(tw["w2"]), (0, 2, 3, 1)).reshape(P, 9 * P), bf16)  # (P, 9P)
    w3t = jnp.asarray(tw["w3"][:, :, 0, 0], bf16)                             # (Cout, P)
    ws2 = tw["ws"][:, :, 0, 0] if has_shortcut else jnp.zeros((Cout, Cin), jnp.float32)
    wst = jnp.asarray(ws2, bf16)                                              # (Cout, Cin)

    # All six gamma/beta vectors packed into one small operand (one DMA).
    bnp = np.zeros((max(Cin, P, 8), 6), np.float32)
    bnp[:Cin, 0] = np.asarray(tw["g1"]); bnp[:Cin, 1] = np.asarray(tw["be1"])
    bnp[:P, 2] = np.asarray(tw["g2"]);  bnp[:P, 3] = np.asarray(tw["be2"])
    bnp[:P, 4] = np.asarray(tw["g3"]);  bnp[:P, 5] = np.asarray(tw["be3"])

    args = (xt, gstack, jnp.asarray(bnp), w1t, w2p, w3t, wst)
    kernel = _make_kernel(Cin, P, Cout, stride, has_shortcut)

    out_t = pl.pallas_call(
        kernel,
        out_shape=jax.ShapeDtypeStruct((Cout, Mo), jnp.float32),
        grid=(1,),
        in_specs=[pl.BlockSpec(a.shape, (lambda i, nd=a.ndim: (0,) * nd)) for a in args],
        out_specs=pl.BlockSpec((Cout, Mo), lambda i: (0, 0)),
        scratch_shapes=[pltpu.VMEM((9 * P, Mo), jnp.float32)],
        compiler_params=pltpu.CompilerParams(dimension_semantics=("arbitrary",)),
    )(*args)

    out = out_t.reshape(Cout, N, Ho, Wo)
    return jnp.transpose(out, (1, 0, 2, 3))                # back to NCHW


# ---------------------------- pure-JAX reference ----------------------------------- #

def ref_forward(x_nchw, tw, stride):
    x = jnp.transpose(x_nchw, (0, 2, 3, 1))

    def bn_relu_ref(v, g, b):
        m = jnp.mean(v, axis=(0, 1, 2))
        var = jnp.mean((v - m) ** 2, axis=(0, 1, 2))
        return jnp.maximum((v - m) / jnp.sqrt(var + EPS) * g + b, 0.0)

    def conv(v, w_torch, s, pad):
        w = jnp.transpose(w_torch, (2, 3, 1, 0))           # OIHW -> HWIO
        return lax.conv_general_dilated(
            v, w, (s, s), [(pad, pad), (pad, pad)],
            dimension_numbers=("NHWC", "HWIO", "NHWC"))

    Cin = x.shape[-1]
    Cout = tw["w3"].shape[0]
    has_shortcut = (stride != 1) or (Cin != Cout)

    h1 = bn_relu_ref(x, tw["g1"], tw["be1"])
    shortcut = conv(h1, tw["ws"], stride, 0) if has_shortcut else x
    o = conv(h1, tw["w1"], 1, 0)
    o = conv(bn_relu_ref(o, tw["g2"], tw["be2"]), tw["w2"], stride, 1)
    o = conv(bn_relu_ref(o, tw["g3"], tw["be3"]), tw["w3"], 1, 0)
    o = o + shortcut
    return jnp.transpose(o, (0, 3, 1, 2))


# ------------------------------------- main ----------------------------------------- #

if __name__ == "__main__":
    key = jax.random.PRNGKey(0)
    N, in_planes, H, W = 2, 8, 16, 16
    planes, stride, expansion = 4, 2, 4
    Cout = expansion * planes

    ks = jax.random.split(key, 5)
    x = jax.random.normal(ks[0], (N, in_planes, H, W), dtype=jnp.float32)

    def winit(k, shape):  # torch OIHW conv weight, kaiming-ish scale
        fan_in = shape[1] * shape[2] * shape[3]
        return jax.random.normal(k, shape, dtype=jnp.float32) * jnp.sqrt(2.0 / fan_in)

    weights = dict(
        w1=winit(ks[1], (planes, in_planes, 1, 1)),
        w2=winit(ks[2], (planes, planes, 3, 3)),
        w3=winit(ks[3], (Cout, planes, 1, 1)),
        ws=winit(ks[4], (Cout, in_planes, 1, 1)),
        g1=jnp.ones((in_planes,), jnp.float32), be1=jnp.zeros((in_planes,), jnp.float32),
        g2=jnp.ones((planes,), jnp.float32),   be2=jnp.zeros((planes,), jnp.float32),
        g3=jnp.ones((planes,), jnp.float32),   be3=jnp.zeros((planes,), jnp.float32),
    )

    out = jax.block_until_ready(preact_bottleneck_forward(x, weights, stride))

    Ho = (H - 1) // stride + 1
    assert out.shape == (N, Cout, Ho, Ho), out.shape

    ref = jax.block_until_ready(ref_forward(x, weights, stride))
    np.testing.assert_allclose(np.asarray(out), np.asarray(ref), rtol=2e-2, atol=5e-2)

    print("KERNEL_OK")
</pallas_src>

<mosaic_0001>
module attributes {stable_mosaic.version = 11 : i64} {
  func.func @kernel(%arg0: i32, %arg1: memref<8x512xf32, #tpu.memory_space<vmem>>, %arg2: memref<9x512x128xbf16, #tpu.memory_space<vmem>>, %arg3: memref<8x6xf32, #tpu.memory_space<vmem>>, %arg4: memref<4x8xbf16, #tpu.memory_space<vmem>>, %arg5: memref<4x36xbf16, #tpu.memory_space<vmem>>, %arg6: memref<16x4xbf16, #tpu.memory_space<vmem>>, %arg7: memref<16x8xbf16, #tpu.memory_space<vmem>>, %arg8: memref<16x128xf32, #tpu.memory_space<vmem>>, %arg9: memref<36x128xf32, #tpu.memory_space<vmem>>) attributes {dimension_semantics = [#tpu.dimension_semantics<arbitrary>], iteration_bounds = array<i64: 1>, scalar_prefetch = 0 : i64, scratch_operands = 1 : i64, tpu.core_type = #tpu.core_type<tc>, window_params = [{pipeline_mode = #tpu.pipeline_mode<synchronous>, transform_indices = @transform_0, window_bounds = array<i64: 8, 512>}, {pipeline_mode = #tpu.pipeline_mode<synchronous>, transform_indices = @transform_1, window_bounds = array<i64: 9, 512, 128>}, {pipeline_mode = #tpu.pipeline_mode<synchronous>, transform_indices = @transform_2, window_bounds = array<i64: 8, 6>}, {pipeline_mode = #tpu.pipeline_mode<synchronous>, transform_indices = @transform_3, window_bounds = array<i64: 4, 8>}, {pipeline_mode = #tpu.pipeline_mode<synchronous>, transform_indices = @transform_4, window_bounds = array<i64: 4, 36>}, {pipeline_mode = #tpu.pipeline_mode<synchronous>, transform_indices = @transform_5, window_bounds = array<i64: 16, 4>}, {pipeline_mode = #tpu.pipeline_mode<synchronous>, transform_indices = @transform_6, window_bounds = array<i64: 16, 8>}, {pipeline_mode = #tpu.pipeline_mode<synchronous>, transform_indices = @transform_7, window_bounds = array<i64: 16, 128>}]} {
    %c0 = arith.constant 0 : index
    %c0_0 = arith.constant 0 : index
    %0 = vector.load %arg1[%c0, %c0_0] : memref<8x512xf32, #tpu.memory_space<vmem>>, vector<8x512xf32>
    %c0_1 = arith.constant 0 : index
    %c0_2 = arith.constant 0 : index
    %1 = vector.load %arg3[%c0_1, %c0_2] : memref<8x6xf32, #tpu.memory_space<vmem>>, vector<8x1xf32>
    %c0_3 = arith.constant 0 : index
    %c1 = arith.constant 1 : index
    %2 = vector.load %arg3[%c0_3, %c1] : memref<8x6xf32, #tpu.memory_space<vmem>>, vector<8x1xf32>
    %c0_4 = arith.constant 0 : index
    %c2 = arith.constant 2 : index
    %3 = vector.load %arg3[%c0_4, %c2] : memref<8x6xf32, #tpu.memory_space<vmem>>, vector<4x1xf32>
    %c0_5 = arith.constant 0 : index
    %c3 = arith.constant 3 : index
    %4 = vector.load %arg3[%c0_5, %c3] : memref<8x6xf32, #tpu.memory_space<vmem>>, vector<4x1xf32>
    %c0_6 = arith.constant 0 : index
    %c4 = arith.constant 4 : index
    %5 = vector.load %arg3[%c0_6, %c4] : memref<8x6xf32, #tpu.memory_space<vmem>>, vector<4x1xf32>
    %c0_7 = arith.constant 0 : index
    %c5 = arith.constant 5 : index
    %6 = vector.load %arg3[%c0_7, %c5] : memref<8x6xf32, #tpu.memory_space<vmem>>, vector<4x1xf32>
    %cst = arith.constant dense<0.000000e+00> : vector<8xf32>
    %7 = vector.multi_reduction <add>, %0, %cst [1] : vector<8x512xf32> to vector<8xf32>
    %8 = vector.shape_cast %7 : vector<8xf32> to vector<8x1xf32>
    %cst_8 = arith.constant 5.120000e+02 : f32
    %9 = vector.broadcast %cst_8 : f32 to vector<8x1xf32>
    %10 = arith.divf %8, %9 : vector<8x1xf32>
    %11 = arith.mulf %0, %0 : vector<8x512xf32>
    %cst_9 = arith.constant dense<0.000000e+00> : vector<8xf32>
    %12 = vector.multi_reduction <add>, %11, %cst_9 [1] : vector<8x512xf32> to vector<8xf32>
    %13 = vector.shape_cast %12 : vector<8xf32> to vector<8x1xf32>
    %cst_10 = arith.constant 5.120000e+02 : f32
    %14 = vector.broadcast %cst_10 : f32 to vector<8x1xf32>
    %15 = arith.divf %13, %14 : vector<8x1xf32>
    %16 = arith.mulf %10, %10 : vector<8x1xf32>
    %17 = arith.subf %15, %16 : vector<8x1xf32>
    %cst_11 = arith.constant 9.99999974E-6 : f32
    %18 = vector.broadcast %cst_11 : f32 to vector<8x1xf32>
    %19 = arith.addf %17, %18 : vector<8x1xf32>
    %20 = math.rsqrt %19 : vector<8x1xf32>
    %21 = arith.mulf %1, %20 : vector<8x1xf32>
    %22 = vector.broadcast %21 : vector<8x1xf32> to vector<8x512xf32>
    %23 = arith.mulf %0, %22 : vector<8x512xf32>
    %24 = arith.mulf %10, %21 : vector<8x1xf32>
    %25 = arith.subf %2, %24 : vector<8x1xf32>
    %26 = vector.broadcast %25 : vector<8x1xf32> to vector<8x512xf32>
    %27 = arith.addf %23, %26 : vector<8x512xf32>
    %cst_12 = arith.constant 0.000000e+00 : f32
    %28 = vector.broadcast %cst_12 : f32 to vector<8x512xf32>
    %29 = arith.maximumf %27, %28 : vector<8x512xf32>
    %30 = arith.truncf %29 : vector<8x512xf32> to vector<8x512xbf16>
    %c0_13 = arith.constant 0 : index
    %c0_14 = arith.constant 0 : index
    %31 = vector.load %arg4[%c0_13, %c0_14] : memref<4x8xbf16, #tpu.memory_space<vmem>>, vector<4x8xbf16>
    %cst_15 = arith.constant dense<0.000000e+00> : vector<4x512xf32>
    %32 = tpu.matmul %31, %30, %cst_15 {dimension_numbers = #tpu.dot_dimension_numbers<[1], [0], [0], [1], [0, 0, 1, 1], [], []>} : vector<4x8xbf16>, vector<8x512xbf16>, vector<4x512xf32> -> vector<4x512xf32>
    %cst_16 = arith.constant dense<0.000000e+00> : vector<4xf32>
    %33 = vector.multi_reduction <add>, %32, %cst_16 [1] : vector<4x512xf32> to vector<4xf32>
    %34 = vector.shape_cast %33 : vector<4xf32> to vector<4x1xf32>
    %cst_17 = arith.constant 5.120000e+02 : f32
    %35 = vector.broadcast %cst_17 : f32 to vector<4x1xf32>
    %36 = arith.divf %34, %35 : vector<4x1xf32>
    %37 = arith.mulf %32, %32 : vector<4x512xf32>
    %cst_18 = arith.constant dense<0.000000e+00> : vector<4xf32>
    %38 = vector.multi_reduction <add>, %37, %cst_18 [1] : vector<4x512xf32> to vector<4xf32>
    %39 = vector.shape_cast %38 : vector<4xf32> to vector<4x1xf32>
    %cst_19 = arith.constant 5.120000e+02 : f32
    %40 = vector.broadcast %cst_19 : f32 to vector<4x1xf32>
    %41 = arith.divf %39, %40 : vector<4x1xf32>
    %42 = arith.mulf %36, %36 : vector<4x1xf32>
    %43 = arith.subf %41, %42 : vector<4x1xf32>
    %cst_20 = arith.constant 9.99999974E-6 : f32
    %44 = vector.broadcast %cst_20 : f32 to vector<4x1xf32>
    %45 = arith.addf %43, %44 : vector<4x1xf32>
    %46 = math.rsqrt %45 : vector<4x1xf32>
    %47 = arith.mulf %3, %46 : vector<4x1xf32>
    %48 = vector.broadcast %47 : vector<4x1xf32> to vector<4x512xf32>
    %49 = arith.mulf %32, %48 : vector<4x512xf32>
    %50 = arith.mulf %36, %47 : vector<4x1xf32>
    %51 = arith.subf %4, %50 : vector<4x1xf32>
    %52 = vector.broadcast %51 : vector<4x1xf32> to vector<4x512xf32>
    %53 = arith.addf %49, %52 : vector<4x512xf32>
    %cst_21 = arith.constant 0.000000e+00 : f32
    %54 = vector.broadcast %cst_21 : f32 to vector<4x512xf32>
    %55 = arith.maximumf %53, %54 : vector<4x512xf32>
    %56 = arith.truncf %55 : vector<4x512xf32> to vector<4x512xbf16>
    %c0_22 = arith.constant 0 : index
    %c0_23 = arith.constant 0 : index
    %c0_24 = arith.constant 0 : index
    %57 = vector.load %arg2[%c0_22, %c0_23, %c0_24] : memref<9x512x128xbf16, #tpu.memory_space<vmem>>, vector<1x512x128xbf16>
    %58 = vector.shape_cast %57 : vector<1x512x128xbf16> to vector<512x128xbf16>
    %cst_25 = arith.constant dense<0.000000e+00> : vector<4x128xf32>
    %59 = tpu.matmul %56, %58, %cst_25 {dimension_numbers = #tpu.dot_dimension_numbers<[1], [0], [0], [1], [0, 0, 1, 1], [], []>} : vector<4x512xbf16>, vector<512x128xbf16>, vector<4x128xf32> -> vector<4x128xf32>
    %c0_26 = arith.constant 0 : index
    %c0_27 = arith.constant 0 : index
    %60 = vector.load %arg9[%c0_26, %c0_27] : memref<36x128xf32, #tpu.memory_space<vmem>>, vector<4x128xf32>
    tpu.vector_store %arg9[%c0_26, %c0_27], %59 {strides = array<i32>} : memref<36x128xf32, #tpu.memory_space<vmem>>, vector<4x128xf32>,
    %c1_28 = arith.constant 1 : index
    %c0_29 = arith.constant 0 : index
    %c0_30 = arith.constant 0 : index
    %61 = vector.load %arg2[%c1_28, %c0_29, %c0_30] : memref<9x512x128xbf16, #tpu.memory_space<vmem>>, vector<1x512x128xbf16>
    %62 = vector.shape_cast %61 : vector<1x512x128xbf16> to vector<512x128xbf16>
    %cst_31 = arith.constant dense<0.000000e+00> : vector<4x128xf32>
    %63 = tpu.matmul %56, %62, %cst_31 {dimension_numbers = #tpu.dot_dimension_numbers<[1], [0], [0], [1], [0, 0, 1, 1], [], []>} : vector<4x512xbf16>, vector<512x128xbf16>, vector<4x128xf32> -> vector<4x128xf32>
    %c4_32 = arith.constant 4 : index
    %c0_33 = arith.constant 0 : index
    %64 = vector.load %arg9[%c4_32, %c0_33] : memref<36x128xf32, #tpu.memory_space<vmem>>, vector<4x128xf32>
    tpu.vector_store %arg9[%c4_32, %c0_33], %63 {strides = array<i32>} : memref<36x128xf32, #tpu.memory_space<vmem>>, vector<4x128xf32>,
    %c2_34 = arith.constant 2 : index
    %c0_35 = arith.constant 0 : index
    %c0_36 = arith.constant 0 : index
    %65 = vector.load %arg2[%c2_34, %c0_35, %c0_36] : memref<9x512x128xbf16, #tpu.memory_space<vmem>>, vector<1x512x128xbf16>
    %66 = vector.shape_cast %65 : vector<1x512x128xbf16> to vector<512x128xbf16>
    %cst_37 = arith.constant dense<0.000000e+00> : vector<4x128xf32>
    %67 = tpu.matmul %56, %66, %cst_37 {dimension_numbers = #tpu.dot_dimension_numbers<[1], [0], [0], [1], [0, 0, 1, 1], [], []>} : vector<4x512xbf16>, vector<512x128xbf16>, vector<4x128xf32> -> vector<4x128xf32>
    %c8 = arith.constant 8 : index
    %c0_38 = arith.constant 0 : index
    %68 = vector.load %arg9[%c8, %c0_38] : memref<36x128xf32, #tpu.memory_space<vmem>>, vector<4x128xf32>
    tpu.vector_store %arg9[%c8, %c0_38], %67 {strides = array<i32>} : memref<36x128xf32, #tpu.memory_space<vmem>>, vector<4x128xf32>,
    %c3_39 = arith.constant 3 : index
    %c0_40 = arith.constant 0 : index
    %c0_41 = arith.constant 0 : index
    %69 = vector.load %arg2[%c3_39, %c0_40, %c0_41] : memref<9x512x128xbf16, #tpu.memory_space<vmem>>, vector<1x512x128xbf16>
    %70 = vector.shape_cast %69 : vector<1x512x128xbf16> to vector<512x128xbf16>
    %cst_42 = arith.constant dense<0.000000e+00> : vector<4x128xf32>
    %71 = tpu.matmul %56, %70, %cst_42 {dimension_numbers = #tpu.dot_dimension_numbers<[1], [0], [0], [1], [0, 0, 1, 1], [], []>} : vector<4x512xbf16>, vector<512x128xbf16>, vector<4x128xf32> -> vector<4x128xf32>
    %c12 = arith.constant 12 : index
    %c0_43 = arith.constant 0 : index
    %72 = vector.load %arg9[%c12, %c0_43] : memref<36x128xf32, #tpu.memory_space<vmem>>, vector<4x128xf32>
    tpu.vector_store %arg9[%c12, %c0_43], %71 {strides = array<i32>} : memref<36x128xf32, #tpu.memory_space<vmem>>, vector<4x128xf32>,
    %c4_44 = arith.constant 4 : index
    %c0_45 = arith.constant 0 : index
    %c0_46 = arith.constant 0 : index
    %73 = vector.load %arg2[%c4_44, %c0_45, %c0_46] : memref<9x512x128xbf16, #tpu.memory_space<vmem>>, vector<1x512x128xbf16>
    %74 = vector.shape_cast %73 : vector<1x512x128xbf16> to vector<512x128xbf16>
    %cst_47 = arith.constant dense<0.000000e+00> : vector<4x128xf32>
    %75 = tpu.matmul %56, %74, %cst_47 {dimension_numbers = #tpu.dot_dimension_numbers<[1], [0], [0], [1], [0, 0, 1, 1], [], []>} : vector<4x512xbf16>, vector<512x128xbf16>, vector<4x128xf32> -> vector<4x128xf32>
    %c16 = arith.constant 16 : index
    %c0_48 = arith.constant 0 : index
    %76 = vector.load %arg9[%c16, %c0_48] : memref<36x128xf32, #tpu.memory_space<vmem>>, vector<4x128xf32>
    tpu.vector_store %arg9[%c16, %c0_48], %75 {strides = array<i32>} : memref<36x128xf32, #tpu.memory_space<vmem>>, vector<4x128xf32>,
    %c5_49 = arith.constant 5 : index
    %c0_50 = arith.constant 0 : index
    %c0_51 = arith.constant 0 : index
    %77 = vector.load %arg2[%c5_49, %c0_50, %c0_51] : memref<9x512x128xbf16, #tpu.memory_space<vmem>>, vector<1x512x128xbf16>
    %78 = vector.shape_cast %77 : vector<1x512x128xbf16> to vector<512x128xbf16>
    %cst_52 = arith.constant dense<0.000000e+00> : vector<4x128xf32>
    %79 = tpu.matmul %56, %78, %cst_52 {dimension_numbers = #tpu.dot_dimension_numbers<[1], [0], [0], [1], [0, 0, 1, 1], [], []>} : vector<4x512xbf16>, vector<512x128xbf16>, vector<4x128xf32> -> vector<4x128xf32>
    %c20 = arith.constant 20 : index
    %c0_53 = arith.constant 0 : index
    %80 = vector.load %arg9[%c20, %c0_53] : memref<36x128xf32, #tpu.memory_space<vmem>>, vector<4x128xf32>
    tpu.vector_store %arg9[%c20, %c0_53], %79 {strides = array<i32>} : memref<36x128xf32, #tpu.memory_space<vmem>>, vector<4x128xf32>,
    %c6 = arith.constant 6 : index
    %c0_54 = arith.constant 0 : index
    %c0_55 = arith.constant 0 : index
    %81 = vector.load %arg2[%c6, %c0_54, %c0_55] : memref<9x512x128xbf16, #tpu.memory_space<vmem>>, vector<1x512x128xbf16>
    %82 = vector.shape_cast %81 : vector<1x512x128xbf16> to vector<512x128xbf16>
    %cst_56 = arith.constant dense<0.000000e+00> : vector<4x128xf32>
    %83 = tpu.matmul %56, %82, %cst_56 {dimension_numbers = #tpu.dot_dimension_numbers<[1], [0], [0], [1], [0, 0, 1, 1], [], []>} : vector<4x512xbf16>, vector<512x128xbf16>, vector<4x128xf32> -> vector<4x128xf32>
    %c24 = arith.constant 24 : index
    %c0_57 = arith.constant 0 : index
    %84 = vector.load %arg9[%c24, %c0_57] : memref<36x128xf32, #tpu.memory_space<vmem>>, vector<4x128xf32>
    tpu.vector_store %arg9[%c24, %c0_57], %83 {strides = array<i32>} : memref<36x128xf32, #tpu.memory_space<vmem>>, vector<4x128xf32>,
    %c7 = arith.constant 7 : index
    %c0_58 = arith.constant 0 : index
    %c0_59 = arith.constant 0 : index
    %85 = vector.load %arg2[%c7, %c0_58, %c0_59] : memref<9x512x128xbf16, #tpu.memory_space<vmem>>, vector<1x512x128xbf16>
    %86 = vector.shape_cast %85 : vector<1x512x128xbf16> to vector<512x128xbf16>
    %cst_60 = arith.constant dense<0.000000e+00> : vector<4x128xf32>
    %87 = tpu.matmul %56, %86, %cst_60 {dimension_numbers = #tpu.dot_dimension_numbers<[1], [0], [0], [1], [0, 0, 1, 1], [], []>} : vector<4x512xbf16>, vector<512x128xbf16>, vector<4x128xf32> -> vector<4x128xf32>
    %c28 = arith.constant 28 : index
    %c0_61 = arith.constant 0 : index
    %88 = vector.load %arg9[%c28, %c0_61] : memref<36x128xf32, #tpu.memory_space<vmem>>, vector<4x128xf32>
    tpu.vector_store %arg9[%c28, %c0_61], %87 {strides = array<i32>} : memref<36x128xf32, #tpu.memory_space<vmem>>, vector<4x128xf32>,
    %c8_62 = arith.constant 8 : index
    %c0_63 = arith.constant 0 : index
    %c0_64 = arith.constant 0 : index
    %89 = vector.load %arg2[%c8_62, %c0_63, %c0_64] : memref<9x512x128xbf16, #tpu.memory_space<vmem>>, vector<1x512x128xbf16>
    %90 = vector.shape_cast %89 : vector<1x512x128xbf16> to vector<512x128xbf16>
    %cst_65 = arith.constant dense<0.000000e+00> : vector<4x128xf32>
    %91 = tpu.matmul %56, %90, %cst_65 {dimension_numbers = #tpu.dot_dimension_numbers<[1], [0], [0], [1], [0, 0, 1, 1], [], []>} : vector<4x512xbf16>, vector<512x128xbf16>, vector<4x128xf32> -> vector<4x128xf32>
    %c32 = arith.constant 32 : index
    %c0_66 = arith.constant 0 : index
    %92 = vector.load %arg9[%c32, %c0_66] : memref<36x128xf32, #tpu.memory_space<vmem>>, vector<4x128xf32>
    tpu.vector_store %arg9[%c32, %c0_66], %91 {strides = array<i32>} : memref<36x128xf32, #tpu.memory_space<vmem>>, vector<4x128xf32>,
    %c0_67 = arith.constant 0 : index
    %c0_68 = arith.constant 0 : index
    %93 = vector.load %arg5[%c0_67, %c0_68] : memref<4x36xbf16, #tpu.memory_space<vmem>>, vector<4x36xbf16>
    %c0_69 = arith.constant 0 : index
    %c0_70 = arith.constant 0 : index
    %94 = vector.load %arg9[%c0_69, %c0_70] : memref<36x128xf32, #tpu.memory_space<vmem>>, vector<36x128xf32>
    %95 = arith.truncf %94 : vector<36x128xf32> to vector<36x128xbf16>
    %cst_71 = arith.constant dense<0.000000e+00> : vector<4x128xf32>
    %96 = tpu.matmul %93, %95, %cst_71 {dimension_numbers = #tpu.dot_dimension_numbers<[1], [0], [0], [1], [0, 0, 1, 1], [], []>} : vector<4x36xbf16>, vector<36x128xbf16>, vector<4x128xf32> -> vector<4x128xf32>
    %cst_72 = arith.constant dense<0.000000e+00> : vector<4xf32>
    %97 = vector.multi_reduction <add>, %96, %cst_72 [1] : vector<4x128xf32> to vector<4xf32>
    %98 = vector.shape_cast %97 : vector<4xf32> to vector<4x1xf32>
    %cst_73 = arith.constant 1.280000e+02 : f32
    %99 = vector.broadcast %cst_73 : f32 to vector<4x1xf32>
    %100 = arith.divf %98, %99 : vector<4x1xf32>
    %101 = arith.mulf %96, %96 : vector<4x128xf32>
    %cst_74 = arith.constant dense<0.000000e+00> : vector<4xf32>
    %102 = vector.multi_reduction <add>, %101, %cst_74 [1] : vector<4x128xf32> to vector<4xf32>
    %103 = vector.shape_cast %102 : vector<4xf32> to vector<4x1xf32>
    %cst_75 = arith.constant 1.280000e+02 : f32
    %104 = vector.broadcast %cst_75 : f32 to vector<4x1xf32>
    %105 = arith.divf %103, %104 : vector<4x1xf32>
    %106 = arith.mulf %100, %100 : vector<4x1xf32>
    %107 = arith.subf %105, %106 : vector<4x1xf32>
    %cst_76 = arith.constant 9.99999974E-6 : f32
    %108 = vector.broadcast %cst_76 : f32 to vector<4x1xf32>
    %109 = arith.addf %107, %108 : vector<4x1xf32>
    %110 = math.rsqrt %109 : vector<4x1xf32>
    %111 = arith.mulf %5, %110 : vector<4x1xf32>
    %112 = vector.broadcast %111 : vector<4x1xf32> to vector<4x128xf32>
    %113 = arith.mulf %96, %112 : vector<4x128xf32>
    %114 = arith.mulf %100, %111 : vector<4x1xf32>
    %115 = arith.subf %6, %114 : vector<4x1xf32>
    %116 = vector.broadcast %115 : vector<4x1xf32> to vector<4x128xf32>
    %117 = arith.addf %113, %116 : vector<4x128xf32>
    %cst_77 = arith.constant 0.000000e+00 : f32
    %118 = vector.broadcast %cst_77 : f32 to vector<4x128xf32>
    %119 = arith.maximumf %117, %118 : vector<4x128xf32>
    %120 = arith.truncf %119 : vector<4x128xf32> to vector<4x128xbf16>
    %c4_78 = arith.constant 4 : index
    %c0_79 = arith.constant 0 : index
    %c0_80 = arith.constant 0 : index
    %121 = vector.load %arg2[%c4_78, %c0_79, %c0_80] : memref<9x512x128xbf16, #tpu.memory_space<vmem>>, vector<1x512x128xbf16>
    %122 = vector.shape_cast %121 : vector<1x512x128xbf16> to vector<512x128xbf16>
    %cst_81 = arith.constant dense<0.000000e+00> : vector<8x128xf32>
    %123 = tpu.matmul %30, %122, %cst_81 {dimension_numbers = #tpu.dot_dimension_numbers<[1], [0], [0], [1], [0, 0, 1, 1], [], []>} : vector<8x512xbf16>, vector<512x128xbf16>, vector<8x128xf32> -> vector<8x128xf32>
    %124 = arith.truncf %123 : vector<8x128xf32> to vector<8x128xbf16>
    %c0_82 = arith.constant 0 : index
    %c0_83 = arith.constant 0 : index
    %125 = vector.load %arg7[%c0_82, %c0_83] : memref<16x8xbf16, #tpu.memory_space<vmem>>, vector<16x8xbf16>
    %cst_84 = arith.constant dense<0.000000e+00> : vector<16x128xf32>
    %126 = tpu.matmul %125, %124, %cst_84 {dimension_numbers = #tpu.dot_dimension_numbers<[1], [0], [0], [1], [0, 0, 1, 1], [], []>} : vector<16x8xbf16>, vector<8x128xbf16>, vector<16x128xf32> -> vector<16x128xf32>
    %c0_85 = arith.constant 0 : index
    %c0_86 = arith.constant 0 : index
    %127 = vector.load %arg6[%c0_85, %c0_86] : memref<16x4xbf16, #tpu.memory_space<vmem>>, vector<16x4xbf16>
    %cst_87 = arith.constant dense<0.000000e+00> : vector<16x128xf32>
    %128 = tpu.matmul %127, %120, %cst_87 {dimension_numbers = #tpu.dot_dimension_numbers<[1], [0], [0], [1], [0, 0, 1, 1], [], []>} : vector<16x4xbf16>, vector<4x128xbf16>, vector<16x128xf32> -> vector<16x128xf32>
    %129 = arith.addf %128, %126 : vector<16x128xf32>
    %c0_88 = arith.constant 0 : index
    %c0_89 = arith.constant 0 : index
    %130 = vector.load %arg8[%c0_88, %c0_89] : memref<16x128xf32, #tpu.memory_space<vmem>>, vector<16x128xf32>
    tpu.vector_store %arg8[%c0_88, %c0_89], %129 {strides = array<i32>} : memref<16x128xf32, #tpu.memory_space<vmem>>, vector<16x128xf32>,
    return
  }
  func.func @transform_0(%arg0: i32) -> (i32, i32) {
    %c0_i32 = arith.constant 0 : i32
    %c0_i32_0 = arith.constant 0 : i32
    %c0_i32_1 = arith.constant 0 : i32
    return %c0_i32, %c0_i32_0 : i32, i32
  }
  func.func @transform_1(%arg0: i32) -> (i32, i32, i32) {
    %c0_i32 = arith.constant 0 : i32
    %c0_i32_0 = arith.constant 0 : i32
    %c0_i32_1 = arith.constant 0 : i32
    %c0_i32_2 = arith.constant 0 : i32
    return %c0_i32, %c0_i32_0, %c0_i32_1 : i32, i32, i32
  }
  func.func @transform_2(%arg0: i32) -> (i32, i32) {
    %c0_i32 = arith.constant 0 : i32
    %c0_i32_0 = arith.constant 0 : i32
    %c0_i32_1 = arith.constant 0 : i32
    return %c0_i32, %c0_i32_0 : i32, i32
  }
  func.func @transform_3(%arg0: i32) -> (i32, i32) {
    %c0_i32 = arith.constant 0 : i32
    %c0_i32_0 = arith.constant 0 : i32
    %c0_i32_1 = arith.constant 0 : i32
    return %c0_i32, %c0_i32_0 : i32, i32
  }
  func.func @transform_4(%arg0: i32) -> (i32, i32) {
    %c0_i32 = arith.constant 0 : i32
    %c0_i32_0 = arith.constant 0 : i32
    %c0_i32_1 = arith.constant 0 : i32
    return %c0_i32, %c0_i32_0 : i32, i32
  }
  func.func @transform_5(%arg0: i32) -> (i32, i32) {
    %c0_i32 = arith.constant 0 : i32
    %c0_i32_0 = arith.constant 0 : i32
    %c0_i32_1 = arith.constant 0 : i32
    return %c0_i32, %c0_i32_0 : i32, i32
  }
  func.func @transform_6(%arg0: i32) -> (i32, i32) {
    %c0_i32 = arith.constant 0 : i32
    %c0_i32_0 = arith.constant 0 : i32
    %c0_i32_1 = arith.constant 0 : i32
    return %c0_i32, %c0_i32_0 : i32, i32
  }
  func.func @transform_7(%arg0: i32) -> (i32, i32) {
    %c0_i32 = arith.constant 0 : i32
    %c0_i32_0 = arith.constant 0 : i32
    %c0_i32_1 = arith.constant 0 : i32
    return %c0_i32, %c0_i32_0 : i32, i32
  }
}

</mosaic_0001>

<bundles_post_ra>
// kernel: tpu_custom_call.1
= control target key start
LH: loop header
LB: loop body
LE: loop exit
PB: predicated region body
PF: predicated region fallthrough
CT: control target
= control target key end

     0   :  { %12 = vsyncpa [#allocation4], 0  ;;  %s5470_s0 = inlined_call_operand.hbm [shape: f32[8,512], index: 0, kind: input, shape index: {}]   ;;  %s5471_s1 = inlined_call_operand.hbm [shape: bf16[9,512,128], index: 1, kind: input, shape index: {}]   ;;  %s5472_s2 = inlined_call_operand.hbm [shape: f32[8,6], index: 2, kind: input, shape index: {}]   ;;  %s5473_s3 = inlined_call_operand.hbm [shape: bf16[4,8], index: 3, kind: input, shape index: {}]   ;;  %s5474_s4 = inlined_call_operand.hbm [shape: bf16[4,36], index: 4, kind: input, shape index: {}]   ;;  %s5475_s5 = inlined_call_operand.vmem [shape: bf16[16,4], index: 5, kind: input, shape index: {}]   ;;  %s5476_s6 = inlined_call_operand.vmem [shape: bf16[16,8], index: 6, kind: input, shape index: {}]   ;;  %s5477_s7 = inlined_call_operand.hbm [shape: f32[16,128], index: 7, kind: output, shape index: {}]  }
   0x1   :  { %13 = vsyncpa [#allocation7], 0 }
   0x2   :  { %14 = vsyncpa [#allocation10], 0 }
   0x3   :  { %15 = vsyncpa [#allocation5], 0  ;;  %s5211_s24 = smov [#allocation6]   ;;  %s5071_s28 = scalar_lea.hbm %s5471_s1, 36864 }
   0x4   :  { %s31_s25 = sshll.u32 %s5211_s24, 4  ;;  %p5072_p0 = scmp.ne.s32.totalorder %s5471_s1, %s5071_s28  ;;  %s32_s25 = int_to_ptr.vmem [resolvable:$true] %s31_s25 }
   0x5   :  { %p5075_p1 = scmp.lt.u32.totalorder %s5071_s28, %s5471_s1 }
   0x7   :  { %p5077_p2 = pnand %p5075_p1, %p5072_p0 }
   0x9   :  { %5080 = shalt.err (!%p5077_p2)
}
   0xa   :  { %s5081_s10 = scalar_lea.vmem %s32_s25, 36864  ;;  %p5086_p4 = scmp.lt.s32.totalorder %s32_s25, %s32_s25 }
   0xb   :  { %p5082_p3 = scmp.ne.s32.totalorder %s32_s25, %s5081_s10  ;;  %p5087_p5 = scmp.lt.s32.totalorder %s5081_s10, %s5081_s10 }
   0xd   :  { %p5088_p6 = por %p5087_p5, %p5086_p4 }
   0xf   :  { %p5089_p7 = pnand %p5088_p6, %p5082_p3 }
  0x11   :  { %5092 = shalt.err (!%p5089_p7)
}
  0x12   :  { %s5212_s11 = smov 64   ;;  %s5213_s12 = smov 4  }
  0x13   :  { %37 = dma.hbm_to_vmem [thread:$0]  %s5471_s1, 36864, %s32_s25, [#allocation7], %s5212_s11, %s5212_s11, %s5213_s12  }
  0x14   :  { %s5214_s15 = smov [#allocation9]   ;;  %s5215_s17 = smov [#allocation3]  }
  0x15   :  { %s54_s16 = sshll.u32 %s5214_s15, 4  ;;  %s22_s18 = sshll.u32 %s5215_s17, 4  ;;  %s55_s16 = int_to_ptr.vmem [resolvable:$true] %s54_s16  ;;  %s23_s18 = int_to_ptr.vmem [resolvable:$true] %s22_s18 }
  0x16   :  { %s5093_s21 = scalar_lea.hbm %s5473_s3, 32 }
  0x17   :  { %p5094_p8 = scmp.ne.s32.totalorder %s5473_s3, %s5093_s21  ;;  %p5097_p9 = scmp.lt.u32.totalorder %s5093_s21, %s5473_s3 }
  0x19   :  { %p5099_p10 = pnand %p5097_p9, %p5094_p8 }
  0x1b   :  { %5102 = shalt.err (!%p5099_p10)
}
  0x1c   :  { %s5103_s1 = scalar_lea.vmem %s55_s16, 32  ;;  %p5108_p12 = scmp.lt.s32.totalorder %s55_s16, %s55_s16 }
  0x1d   :  { %p5104_p11 = scmp.ne.s32.totalorder %s55_s16, %s5103_s1  ;;  %p5109_p13 = scmp.lt.s32.totalorder %s5103_s1, %s5103_s1 }
  0x1f   :  { %p5110_p0 = por %p5109_p13, %p5108_p12 }
  0x21   :  { %p5111_p1 = pnand %p5110_p0, %p5104_p11 }
  0x23   :  { %5114 = shalt.err (!%p5111_p1)
}
  0x24   :  { %57 = dma.hbm_to_vmem [thread:$0]  %s5473_s3, 32, %s55_s16, [#allocation10]  }
  0x25   :  { %s5115_s30 = scalar_lea.hbm %s5470_s0, 512 }
  0x26   :  { %p5116_p2 = scmp.ne.s32.totalorder %s5470_s0, %s5115_s30  ;;  %p5119_p3 = scmp.lt.u32.totalorder %s5115_s30, %s5470_s0 }
  0x28   :  { %p5121_p4 = pnand %p5119_p3, %p5116_p2 }
  0x2a   :  { %5124 = shalt.err (!%p5121_p4)
}
  0x2b   :  { %s5125_s12 = scalar_lea.vmem %s23_s18, 512  ;;  %p5130_p6 = scmp.lt.s32.totalorder %s23_s18, %s23_s18 }
  0x2c   :  { %p5126_p5 = scmp.ne.s32.totalorder %s23_s18, %s5125_s12  ;;  %p5131_p7 = scmp.lt.s32.totalorder %s5125_s12, %s5125_s12 }
  0x2e   :  { %p5132_p8 = por %p5131_p7, %p5130_p6 }
  0x30   :  { %p5133_p9 = pnand %p5132_p8, %p5126_p5 }
  0x32   :  { %5136 = shalt.err (!%p5133_p9)
}
  0x33   :  { %25 = dma.hbm_to_vmem [thread:$0]  %s5470_s0, 512, %s23_s18, [#allocation4]  }
  0x34   :  { %s5216_s14 = smov [#allocation8]   ;;  %s5217_s16 = smov [#allocation11]  }
  0x35   :  { %s44_s15 = sshll.u32 %s5216_s14, 4  ;;  %s64_s17 = sshll.u32 %s5217_s16, 4  ;;  %s45_s15 = int_to_ptr.vmem [resolvable:$true] %s44_s15  ;;  %s65_s17 = int_to_ptr.vmem [resolvable:$true] %s64_s17 }
  0x36   :  { %s5137_s21 = scalar_lea.hbm %s5472_s2, 128 }
  0x37   :  { %p5138_p10 = scmp.ne.s32.totalorder %s5472_s2, %s5137_s21  ;;  %p5141_p11 = scmp.lt.u32.totalorder %s5137_s21, %s5472_s2 }
  0x39   :  { %p5143_p12 = pnand %p5141_p11, %p5138_p10 }
  0x3b   :  { %5146 = shalt.err (!%p5143_p12)
}
  0x3c   :  { %s5147_s0 = scalar_lea.vmem %s45_s15, 128  ;;  %p5152_p0 = scmp.lt.s32.totalorder %s45_s15, %s45_s15 }
  0x3d   :  { %p5148_p13 = scmp.ne.s32.totalorder %s45_s15, %s5147_s0  ;;  %p5153_p1 = scmp.lt.s32.totalorder %s5147_s0, %s5147_s0 }
  0x3f   :  { %p5154_p2 = por %p5153_p1, %p5152_p0 }
  0x41   :  { %p5155_p3 = pnand %p5154_p2, %p5148_p13 }
  0x43   :  { %5158 = shalt.err (!%p5155_p3)
}
  0x44   :  { %47 = dma.hbm_to_vmem [thread:$0]  %s5472_s2, 128, %s45_s15, [#allocation7]  }
  0x45   :  { %s5159_s28 = scalar_lea.hbm %s5474_s4, 32 }
  0x46   :  { %p5160_p4 = scmp.ne.s32.totalorder %s5474_s4, %s5159_s28  ;;  %p5163_p5 = scmp.lt.u32.totalorder %s5159_s28, %s5474_s4 }
  0x48   :  { %p5165_p6 = pnand %p5163_p5, %p5160_p4 }
  0x4a   :  { %5168 = shalt.err (!%p5165_p6)
}
  0x4b   :  { %s5169_s10 = scalar_lea.vmem %s65_s17, 32  ;;  %p5174_p8 = scmp.lt.s32.totalorder %s65_s17, %s65_s17 }
  0x4c   :  { %p5170_p7 = scmp.ne.s32.totalorder %s65_s17, %s5169_s10  ;;  %p5175_p9 = scmp.lt.s32.totalorder %s5169_s10, %s5169_s10 }
  0x4e   :  { %p5176_p10 = por %p5175_p9, %p5174_p8 }
  0x50   :  { %p5177_p11 = pnand %p5176_p10, %p5170_p7 }
  0x52   :  { %5180 = shalt.err (!%p5177_p11)
}
  0x53   :  { %67 = dma.hbm_to_vmem [thread:$0]  %s5474_s4, 32, %s65_s17, [#allocation10]  }
  0x54   :  { %5203 = dma.done.wait [#allocation4], 512  }
  0x55   :  { %5204 = vsyncadd [#allocation4], 4294966784 }
  0x56   :  { %5205 = dma.done.wait [#allocation7], 36992  }
  0x57   :  { %5206 = vsyncadd [#allocation7], 4294930304 }
  0x58   :  { %5207 = dma.done.wait [#allocation10], 64  }
  0x59   :  { %5208 = vsyncadd [#allocation10], 4294967232  ;;  %v88_v0 = vld [vmem:[#allocation3] sm:$0xff]  ;;  %v89_v1 = vld [vmem:[#allocation3 + $0x8] sm:$0xff]  ;;  %v5218_v14 = vmov 0   ;;  %v5219_v22 = vmov 1  }
  0x5a   :  { %v90_v2 = vld [vmem:[#allocation3 + $0x10] sm:$0xff]  ;;  %v91_v3 = vld [vmem:[#allocation3 + $0x18] sm:$0xff]  ;;  %v94_v4 = vadd.f32 %v89_v1, %v88_v0  ;;  %v101_v5 = vmul.f32 %v88_v0, %v88_v0  ;;  %v102_v6 = vmul.f32 %v89_v1, %v89_v1  ;;  %4731 = vset.pattern.permute.xlu1 %v5218_v14  ;;  %198 = vmatprep.mubr.bf16.mxu0 %v5218_v14  ;;  %v92_v23 = vld [vmem:[#allocation8] sm:$0xff]  ;;  %s5220_s4 = smov 1   ;;  %vm153_vm0 = vcmask 1043456   ;;  %s5227_s14 = smov [#allocation12]  }
  0x5b   :  { %v103_v7 = vmul.f32 %v90_v2, %v90_v2  ;;  %v104_v9 = vmul.f32 %v91_v3, %v91_v3  ;;  %239 = vmatprep.mubr.bf16.mxu1 %v5218_v14  ;;  %4732 = vset.pattern.permute.xlu0 %v5219_v22  ;;  %v5066_v30 = vld [vmem:[#allocation3 + $0x8] sm:$0xff]  ;;  %v5067_v32 = vld [vmem:[#allocation3 + $0x18] sm:$0xff]  ;;  %v5068_v34 = vld [vmem:[#allocation3] sm:$0xff]  ;;  %vm149_vm1 = vcmask 64512   ;;  %vm5224_vm2 = vmmov 0   ;;  %s3895_s15 = sshll.u32 %s5227_s14, 4  ;;  %s3896_s15 = int_to_ptr.vmem [resolvable:$true] %s3895_s15 }
  0x5c   :  { %v95_v8 = vadd.f32 %v94_v4, %v90_v2  ;;  %v105_v10 = vadd.f32 %v102_v6, %v101_v5  ;;  %v5069_v36 = vld [vmem:[#allocation3 + $0x10] sm:$0xff]  ;;  %v148_v53 = vld [vmem:[#allocation9] sm:$0x3]  ;;  %vm3363_vm3 = vcmask 1041408   ;;  %vm3359_vm4 = vcmask 293888   ;;  %s5181_s16 = scalar_lea.vmem %s3896_s15, 256  ;;  %p5186_p13 = scmp.lt.s32.totalorder %s3896_s15, %s3896_s15 }
  0x5d   :  { %vm3840_vm5 = vcmask 31744   ;;  %p5182_p12 = scmp.ne.s32.totalorder %s3896_s15, %s5181_s16  ;;  %p5187_p0 = scmp.lt.s32.totalorder %s5181_s16, %s5181_s16 }
  0x5e   :  { %v96_v11 = vadd.f32 %v95_v8, %v91_v3  ;;  %v106_v12 = vadd.f32 %v105_v10, %v103_v7 }
  0x5f   :  { %p5188_p1 = por %p5187_p0, %p5186_p13 }
  0x60   :  { %97 = vadd.xlane.f32.xlu0 %v96_v11  ;;  %v107_v13 = vadd.f32 %v106_v12, %v104_v9 }
  0x61   :  { %p5189_p2 = pnand %p5188_p1, %p5182_p12 }
  0x64   :  { %108 = vadd.xlane.f32.xlu0 %v107_v13 }
  0xed   :  { %v98_v15 = vpop.xlane.xlu0 %97 }
  0xee   :  { %v100_v16 = vmul.f32 0.001953125, %v98_v15 }
  0xf0   :  { %v111_v18 = vmul.f32 %v100_v16, %v100_v16 }
  0xf1   :  { %v109_v17 = vpop.xlane.xlu0 %108 }
  0xf2   :  { %v110_v19 = vmul.f32 0.001953125, %v109_v17 }
  0xf4   :  { %v112_v20 = vsub.f32 %v110_v19, %v111_v18 }
  0xf6   :  { %v113_v21 = vadd.f32 1e-05, %v112_v20 }
  0xf8   :  { %5060 = vrsqrt.f32 %v113_v21 }
 0x102   :  { %v5061_v24 = vpop.eup %5060 }
 0x103   :  { %v115_v25 = vmul.f32 %v5061_v24, %v92_v23  ;;  %v5377_v24 = vld [vmem:[#allocation8] sm:$0xf] }
 0x105   :  { %v125_v26 = vmul.f32 %v115_v25, %v100_v16  ;;  %v5221_v16 = vmov 2  }
 0x107   :  { %127 = vrot.lane.b32.xlu1 %v125_v26, %s5220_s4 }
 0x10b   :  { %118 = vperm.xlu1 %4731, %v115_v25  }
 0x179   :  { %v128_v27 = vpop.permute.xlu1 %127 }
 0x17a   :  { %v130_v28 = vsub.f32 %v92_v23, %v128_v27 }
 0x17c   :  { %133 = vperm.xlu0 %4732, %v130_v28   ;;  %v4738_v28 = vld [vmem:[#allocation6 + $0x40] sm:$0xff]  }
 0x180   :  { %4733 = vset.pattern.permute.xlu0 %v5221_v16 }
 0x18a   :  { %v119_v29 = vpop.permute.xlu1 %118 }
 0x18b   :  { %v122_v31 = vmul.f32 %v5066_v30, %v119_v29  ;;  %v124_v33 = vmul.f32 %v5067_v32, %v119_v29  ;;  %v121_v35 = vmul.f32 %v5068_v34, %v119_v29  ;;  %v123_v37 = vmul.f32 %v5069_v36, %v119_v29  ;;  %v4739_v29 = vld [vmem:[#allocation6 + $0xc0] sm:$0xff]   ;;  %v4742_v32 = vld [vmem:[#allocation6 + $0x48] sm:$0xff]  }
 0x18c   :  { %v4740_v30 = vld [vmem:[#allocation6] sm:$0xff]   ;;  %v4744_v34 = vld [vmem:[#allocation6 + $0x8] sm:$0xff]  }
 0x18d   :  { %v4745_v36 = vld [vmem:[#allocation6 + $0x88] sm:$0xff]  }
 0x1fb   :  { %v134_v38 = vpop.permute.xlu0 %133 }
 0x1fc   :  { %v137_v39 = vadd.f32 %v134_v38, %v122_v31  ;;  %v139_v40 = vadd.f32 %v134_v38, %v124_v33  ;;  %v136_v41 = vadd.f32 %v134_v38, %v121_v35  ;;  %v138_v42 = vadd.f32 %v134_v38, %v123_v37  ;;  %v4741_v31 = vld [vmem:[#allocation6 + $0x80] sm:$0xff]   ;;  %v4743_v33 = vld [vmem:[#allocation6 + $0xc8] sm:$0xff]   ;;  %v4746_v37 = vld [vmem:[#allocation6 + $0x50] sm:$0xff]  }
 0x1fd   :  { %v5222_v35 = vmov 3   ;;  %v4747_v38 = vld [vmem:[#allocation6 + $0xd0] sm:$0xff]  }
 0x1fe   :  { %v141_v43 = vmax.f32 %v137_v39, 0.0  ;;  %v143_v44 = vmax.f32 %v139_v40, 0.0  ;;  %v140_v45 = vmax.f32 %v136_v41, 0.0  ;;  %v142_v46 = vmax.f32 %v138_v42, 0.0  ;;  %v4748_v39 = vld [vmem:[#allocation6 + $0x10] sm:$0xff]   ;;  %v4750_v41 = vld [vmem:[#allocation6 + $0x58] sm:$0xff]  }
 0x1ff   :  { %v4749_v40 = vld [vmem:[#allocation6 + $0x90] sm:$0xff]   ;;  %v4751_v42 = vld [vmem:[#allocation6 + $0xd8] sm:$0xff]  }
 0x200   :  { %v5331_v47 = vpack.c.bf16 %v141_v43, %v141_v43  ;;  %v5333_v48 = vpack.c.bf16 %v143_v44, %v143_v44  ;;  %v5335_v49 = vpack.c.bf16 %v140_v45, %v140_v45  ;;  %v5337_v50 = vpack.c.bf16 %v142_v46, %v142_v46  ;;  %v4752_v43 = vld [vmem:[#allocation6 + $0x18] sm:$0xff]   ;;  %v4754_v45 = vld [vmem:[#allocation6 + $0x60] sm:$0xff]  }
 0x201   :  { %v4753_v44 = vld [vmem:[#allocation6 + $0x98] sm:$0xff]   ;;  %v4755_v46 = vld [vmem:[#allocation6 + $0xe0] sm:$0xff]  }
 0x202   :  { %3909 = vmatprep.subr.msk.bf16.mxu0 %vm153_vm0, %v5331_v47  ;;  %3911 = vmatprep.subr.msk.bf16.mxu1 %vm153_vm0, %v5333_v48  ;;  %v155_v51 = vsel %vm153_vm0, %v5335_v49, 0  ;;  %v161_v52 = vsel %vm153_vm0, %v5337_v50, 0 }
 0x203   :  { %167 = vmatpush1.bf16.msra.mxu0 %v155_v51  ;;  %208 = vmatpush1.bf16.msra.mxu1 %v161_v52  ;;  %v4756_v51 = vld [vmem:[#allocation6 + $0x20] sm:$0xff]  }
 0x204   :  { %4238 = vmatprep.subr.bf16.mxu0 %v4738_v28  ;;  %4260 = vmatprep.subr.bf16.mxu1 %v4739_v29  ;;  %v4757_v52 = vld [vmem:[#allocation6 + $0xa0] sm:$0xff]   ;;  %v4777_v28 = vld [vmem:[#allocation6 + $0x188] sm:$0xff]   ;;  %v4778_v29 = vld [vmem:[#allocation6 + $0x150] sm:$0xff]  }
 0x206   :  { %3910 = vmatmul.mubr.msk.bf16.vlgmr.msra.gmra.mrb[0].mxu0 %vm149_vm1, %v148_v53  ;;  %3912 = vmatmul.mubr.msk.bf16.vlgmr.msra.gmra.mrb[0].mxu1 %vm149_vm1, %v148_v53  ;;  %v4758_v53 = vld [vmem:[#allocation6 + $0x68] sm:$0xff]  }
 0x207   :  { %4239 = vmatpush3.bf16.msra.mxu0 %v4740_v30  ;;  %4261 = vmatpush3.bf16.msra.mxu1 %v4741_v31  ;;  %v4779_v30 = vld [vmem:[#allocation6 + $0x1d0] sm:$0xff]  }
 0x208   :  { %4240 = vmatprep.subr.bf16.mxu0 %v4742_v32  ;;  %4262 = vmatprep.subr.bf16.mxu1 %v4743_v33  ;;  %v4780_v31 = vld [vmem:[#allocation6 + $0x110] sm:$0xff]   ;;  %v4782_v33 = vld [vmem:[#allocation6 + $0x158] sm:$0xff]  }
 0x209   :  { %v4781_v32 = vld [vmem:[#allocation6 + $0x190] sm:$0xff]  }
 0x20b   :  { %4241 = vmatpush3.bf16.msra.mxu0 %v4744_v34  ;;  %4263 = vmatpush3.bf16.msra.mxu1 %v4745_v36  ;;  %v4783_v34 = vld [vmem:[#allocation6 + $0x1d8] sm:$0xff]  }
 0x20c   :  { %4242 = vmatprep.subr.bf16.mxu0 %v4746_v37  ;;  %4264 = vmatprep.subr.bf16.mxu1 %v4747_v38  ;;  %v4785_v36 = vld [vmem:[#allocation6 + $0x198] sm:$0xff]   ;;  %v4786_v37 = vld [vmem:[#allocation6 + $0x160] sm:$0xff]  }
 0x20d   :  { %v4787_v38 = vld [vmem:[#allocation6 + $0x1e0] sm:$0xff]  }
 0x20f   :  { %4243 = vmatpush3.bf16.msra.mxu0 %v4748_v39  ;;  %4265 = vmatpush3.bf16.msra.mxu1 %v4749_v40  ;;  %v4788_v39 = vld [vmem:[#allocation6 + $0x120] sm:$0xff]  }
 0x210   :  { %4244 = vmatprep.subr.bf16.mxu0 %v4750_v41  ;;  %4266 = vmatprep.subr.bf16.mxu1 %v4751_v42  ;;  %v4789_v40 = vld [vmem:[#allocation6 + $0x1a0] sm:$0xff]   ;;  %v4790_v41 = vld [vmem:[#allocation6 + $0x168] sm:$0xff]  }
 0x211   :  { %v4791_v42 = vld [vmem:[#allocation6 + $0x1e8] sm:$0xff]  }
 0x213   :  { %4245 = vmatpush3.bf16.msra.mxu0 %v4752_v43  ;;  %4267 = vmatpush3.bf16.msra.mxu1 %v4753_v44  ;;  %v4792_v43 = vld [vmem:[#allocation6 + $0x128] sm:$0xff]  }
 0x214   :  { %4246 = vmatprep.subr.bf16.mxu0 %v4754_v45  ;;  %4268 = vmatprep.subr.bf16.mxu1 %v4755_v46  ;;  %v4793_v44 = vld [vmem:[#allocation6 + $0x1a8] sm:$0xff]   ;;  %v4794_v45 = vld [vmem:[#allocation6 + $0x170] sm:$0xff]  }
 0x215   :  { %v4795_v46 = vld [vmem:[#allocation6 + $0x1f0] sm:$0xff]  }
 0x217   :  { %4247 = vmatpush3.bf16.msra.mxu0 %v4756_v51  ;;  %4269 = vmatpush3.bf16.msra.mxu1 %v4757_v52  ;;  %v4796_v51 = vld [vmem:[#allocation6 + $0x130] sm:$0xff]  }
 0x218   :  { %4248 = vmatprep.subr.bf16.mxu0 %v4758_v53  ;;  %v4797_v52 = vld [vmem:[#allocation6 + $0x1b0] sm:$0xff]   ;;  %v4798_v53 = vld [vmem:[#allocation6 + $0x178] sm:$0xff]  }
 0x2d9   :  { %v5349_v54 = vpop.f32.mrb[0].mxu0  ;;  %v5351_v55 = vpop.f32.mrb[0].mxu1 }
 0x2da   :  { %v248_v56 = vsel %vm153_vm0, %v5349_v54, 0.0  ;;  %v258_v57 = vmul.f32 %v5349_v54, %v5349_v54  ;;  %v260_v58 = vmul.f32 %v5351_v55, %v5351_v55  ;;  %v5359_v59 = vpop.f32.mrb[1].mxu0  ;;  %v5361_v60 = vpop.f32.mrb[1].mxu1  ;;  %v251_v61 = vsel %vm153_vm0, %v5351_v55, 0.0 }
 0x2db   :  { %v249_v62 = vsel %vm153_vm0, %v5359_v59, 0.0  ;;  %v259_v63 = vmul.f32 %v5359_v59, %v5359_v59  ;;  %v204_v0 = vpop.f32.mrb[2].mxu0  ;;  %v245_v1 = vpop.f32.mrb[2].mxu1  ;;  %v261_v7 = vmul.f32 %v5361_v60, %v5361_v60  ;;  %v253_v11 = vsel %vm153_vm0, %v5361_v60, 0.0 }
 0x2dc   :  { %v262_v2 = vsel %vm153_vm0, %v258_v57, 0.0  ;;  %v250_v3 = vadd.f32 %v249_v62, %v248_v56  ;;  %v205_v4 = vpop.f32.mrb[3].mxu0  ;;  %v246_v5 = vpop.f32.mrb[3].mxu1  ;;  %v265_v8 = vsel %vm153_vm0, %v260_v58, 0.0  ;;  %v4759_v56 = vld [vmem:[#allocation6 + $0xe8] sm:$0xff]   ;;  %v4763_v62 = vld [vmem:[#allocation6 + $0xf0] sm:$0xff]  }
 0x2dd   :  { %v263_v6 = vsel %vm153_vm0, %v259_v63, 0.0  ;;  %v267_v14 = vsel %vm153_vm0, %v261_v7, 0.0  ;;  %v4760_v57 = vld [vmem:[#allocation6 + $0x28] sm:$0xff]   ;;  %4270 = vmatprep.subr.bf16.mxu1 %v4759_v56  ;;  %v4764_v63 = vld [vmem:[#allocation6 + $0x30] sm:$0xff]   ;;  %v4767_v4 = vld [vmem:[#allocation6 + $0xf8] sm:$0xff]  }
 0x2de   :  { %v252_v9 = vadd.f32 %v251_v61, %v250_v3  ;;  %v264_v10 = vadd.f32 %v263_v6, %v262_v2  ;;  %v4761_v58 = vld [vmem:[#allocation6 + $0xa8] sm:$0xff]   ;;  %v4762_v61 = vld [vmem:[#allocation6 + $0x70] sm:$0xff]   ;;  %4249 = vmatpush3.bf16.msra.mxu0 %v4760_v57  ;;  %v4766_v3 = vld [vmem:[#allocation6 + $0x78] sm:$0xff]  }
 0x2df   :  { %4271 = vmatpush3.bf16.msra.mxu1 %v4761_v58  ;;  %4250 = vmatprep.subr.bf16.mxu0 %v4762_v61  ;;  %v4765_v0 = vld [vmem:[#allocation6 + $0xb0] sm:$0xff]   ;;  %v4768_v5 = vld [vmem:[#allocation6 + $0x38] sm:$0xff]   ;;  %v4770_v7 = vld [vmem:[#allocation6 + $0x140] sm:$0xff]  }
 0x2e0   :  { %v254_v12 = vadd.f32 %v253_v11, %v252_v9  ;;  %v266_v13 = vadd.f32 %v265_v8, %v264_v10  ;;  %4272 = vmatprep.subr.bf16.mxu1 %v4763_v62  ;;  %v4769_v6 = vld [vmem:[#allocation6 + $0xb8] sm:$0xff]   ;;  %v4771_v8 = vld [vmem:[#allocation6 + $0x1c0] sm:$0xff]  }
 0x2e1   :  { %v4799_v56 = vld [vmem:[#allocation6 + $0x1f8] sm:$0xff]   ;;  %v4802_v61 = vld [vmem:[#allocation6 + $0x240] sm:$0xff]  }
 0x2e2   :  { %255 = vadd.xlane.f32.xlu1 %v254_v12  ;;  %v268_v15 = vadd.f32 %v267_v14, %v266_v13  ;;  %4251 = vmatpush3.bf16.msra.mxu0 %v4764_v63  ;;  %v4800_v57 = vld [vmem:[#allocation6 + $0x138] sm:$0xff]   ;;  %v4803_v62 = vld [vmem:[#allocation6 + $0x2c0] sm:$0xff]  }
 0x2e3   :  { %4273 = vmatpush3.bf16.msra.mxu1 %v4765_v0  ;;  %4252 = vmatprep.subr.bf16.mxu0 %v4766_v3  ;;  %v4801_v58 = vld [vmem:[#allocation6 + $0x1b8] sm:$0xff]   ;;  %v4804_v63 = vld [vmem:[#allocation6 + $0x200] sm:$0xff]   ;;  %v4808_v3 = vld [vmem:[#allocation6 + $0x208] sm:$0xff]  }
 0x2e4   :  { %4274 = vmatprep.subr.bf16.mxu1 %v4767_v4  ;;  %v4805_v0 = vld [vmem:[#allocation6 + $0x280] sm:$0xff]   ;;  %v4809_v4 = vld [vmem:[#allocation6 + $0x288] sm:$0xff]  }
 0x2e6   :  { %269 = vadd.xlane.f32.xlu1 %v268_v15  ;;  %4253 = vmatpush3.bf16.msra.mxu0 %v4768_v5  ;;  %v4810_v5 = vld [vmem:[#allocation6 + $0x250] sm:$0xff]  }
 0x2e7   :  { %4275 = vmatpush3.bf16.msra.mxu1 %v4769_v6  ;;  %4282 = vmatprep.subr.bf16.mxu0 %v4770_v7  ;;  %v4811_v6 = vld [vmem:[#allocation6 + $0x2d0] sm:$0xff]  }
 0x2e8   :  { %4304 = vmatprep.subr.bf16.mxu1 %v4771_v8  ;;  %v4812_v7 = vld [vmem:[#allocation6 + $0x210] sm:$0xff]  }
 0x2e9   :  { %v4813_v8 = vld [vmem:[#allocation6 + $0x290] sm:$0xff]  }
 0x36f   :  { %v256_v17 = vpop.xlane.xlu1 %255 }
 0x370   :  { %v257_v18 = vmul.f32 0.001953125, %v256_v17 }
 0x372   :  { %v272_v20 = vmul.f32 %v257_v18, %v257_v18 }
 0x373   :  { %v270_v19 = vpop.xlane.xlu1 %269 }
 0x374   :  { %v271_v21 = vmul.f32 0.001953125, %v270_v19 }
 0x376   :  { %v273_v22 = vsub.f32 %v271_v21, %v272_v20 }
 0x378   :  { %v274_v23 = vadd.f32 1e-05, %v273_v22 }
 0x37a   :  { %5062 = vrsqrt.f32 %v274_v23 }
 0x384   :  { %v5063_v25 = vpop.eup %5062 }
 0x385   :  { %v276_v26 = vmul.f32 %v5063_v25, %v5377_v24  ;;  %v4773_v25 = vld [vmem:[#allocation6 + $0x180] sm:$0xff]  }
 0x387   :  { %279 = vperm.xlu0 %4733, %v276_v26   ;;  %v286_v27 = vmul.f32 %v276_v26, %v257_v18  ;;  %v4775_v26 = vld [vmem:[#allocation6 + $0x1c8] sm:$0xff]  }
 0x389   :  { %288 = vrot.lane.b32.xlu1 %v286_v27, %s5220_s4  ;;  %v4776_v27 = vld [vmem:[#allocation6 + $0x108] sm:$0xff]  }
 0x38b   :  { %4734 = vset.pattern.permute.xlu0 %v5222_v35  ;;  %v4784_v35 = vld [vmem:[#allocation6 + $0x118] sm:$0xff]  }
 0x3fb   :  { %v289_v1 = vpop.permute.xlu1 %288 }
 0x3fc   :  { %v291_v2 = vsub.f32 %v5377_v24, %v289_v1  ;;  %v4806_v1 = vld [vmem:[#allocation6 + $0x248] sm:$0xff]  }
 0x3fe   :  { %294 = vperm.xlu0 %4734, %v291_v2   ;;  %v4807_v2 = vld [vmem:[#allocation6 + $0x2c8] sm:$0xff]  }
 0x406   :  { %v280_v9 = vpop.permute.xlu0 %279 }
 0x407   :  { %v282_v10 = vmul.f32 %v280_v9, %v5349_v54  ;;  %v283_v11 = vmul.f32 %v280_v9, %v5359_v59  ;;  %v284_v12 = vmul.f32 %v280_v9, %v5351_v55  ;;  %v285_v13 = vmul.f32 %v280_v9, %v5361_v60  ;;  %v4772_v55 = vld [vmem:[#allocation6 + $0x100] sm:$0xff]   ;;  %v4774_v60 = vld [vmem:[#allocation6 + $0x148] sm:$0xff]   ;;  %v4814_v9 = vld [vmem:[#allocation6 + $0x258] sm:$0xff]  }
 0x47d   :  { %v295_v14 = vpop.permute.xlu0 %294 }
 0x47e   :  { %v297_v15 = vadd.f32 %v295_v14, %v282_v10  ;;  %v298_v16 = vadd.f32 %v295_v14, %v283_v11  ;;  %v299_v17 = vadd.f32 %v295_v14, %v284_v12  ;;  %v300_v18 = vadd.f32 %v295_v14, %v285_v13  ;;  %v4815_v10 = vld [vmem:[#allocation6 + $0x2d8] sm:$0xff]   ;;  %v4818_v13 = vld [vmem:[#allocation6 + $0x260] sm:$0xff]  }
 0x47f   :  { %v4816_v11 = vld [vmem:[#allocation6 + $0x218] sm:$0xff]   ;;  %v4819_v14 = vld [vmem:[#allocation6 + $0x2e0] sm:$0xff]  }
 0x480   :  { %v301_v19 = vmax.f32 %v297_v15, 0.0  ;;  %v302_v20 = vmax.f32 %v298_v16, 0.0  ;;  %v303_v21 = vmax.f32 %v299_v17, 0.0  ;;  %v304_v22 = vmax.f32 %v300_v18, 0.0  ;;  %v4817_v12 = vld [vmem:[#allocation6 + $0x298] sm:$0xff]   ;;  %v4820_v15 = vld [vmem:[#allocation6 + $0x220] sm:$0xff]  }
 0x481   :  { %v4821_v16 = vld [vmem:[#allocation6 + $0x2a0] sm:$0xff]   ;;  %v4822_v17 = vld [vmem:[#allocation6 + $0x268] sm:$0xff]  }
 0x482   :  { %v5386_v23 = vpack.c.bf16 %v301_v19, %v301_v19  ;;  %v5388_v24 = vpack.c.bf16 %v302_v20, %v302_v20  ;;  %v5390_v54 = vpack.c.bf16 %v303_v21, %v303_v21  ;;  %v5392_v59 = vpack.c.bf16 %v304_v22, %v304_v22  ;;  %v4823_v18 = vld [vmem:[#allocation6 + $0x2e8] sm:$0xff]   ;;  %v4826_v21 = vld [vmem:[#allocation6 + $0x270] sm:$0xff]  }
 0x483   :  { %v4824_v19 = vld [vmem:[#allocation6 + $0x228] sm:$0xff]   ;;  %v4827_v22 = vld [vmem:[#allocation6 + $0x2f0] sm:$0xff]  }
 0x484   :  { %597 = vmatprep.mubr.bf16.mxu0 %v5388_v24  ;;  %637 = vmatprep.mubr.bf16.mxu1 %v5392_v59  ;;  %v4825_v20 = vld [vmem:[#allocation6 + $0x2a8] sm:$0xff]  }
 0x485   :  { %598 = vmatmul.mubr.bf16.vlgmr.msra.gmra.mrb[4].mxu0 %v5386_v23  ;;  %638 = vmatmul.mubr.bf16.vlgmr.msra.gmra.mrb[4].mxu1 %v5390_v54 }
 0x486   :  { %4283 = vmatpush3.bf16.msra.mxu0 %v4772_v55  ;;  %4305 = vmatpush3.bf16.msra.mxu1 %v4773_v25  ;;  %v4828_v55 = vld [vmem:[#allocation6 + $0x230] sm:$0xff]  }
 0x487   :  { %935 = vmatprep.mubr.bf16.mxu0 %v5388_v24  ;;  %975 = vmatprep.mubr.bf16.mxu1 %v5392_v59  ;;  %v4829_v25 = vld [vmem:[#allocation6 + $0x2b0] sm:$0xff]  }
 0x488   :  { %4284 = vmatprep.subr.bf16.mxu0 %v4774_v60  ;;  %4306 = vmatprep.subr.bf16.mxu1 %v4775_v26  ;;  %v4830_v60 = vld [vmem:[#allocation6 + $0x278] sm:$0xff]  }
 0x489   :  { %v4831_v26 = vld [vmem:[#allocation6 + $0x2f8] sm:$0xff]  }
 0x48a   :  { %4285 = vmatpush3.bf16.msra.mxu0 %v4776_v27  ;;  %4307 = vmatpush3.bf16.msra.mxu1 %v4777_v28  ;;  %v4832_v27 = vld [vmem:[#allocation6 + $0x238] sm:$0xff]  }
 0x48b   :  { %4286 = vmatprep.subr.bf16.mxu0 %v4778_v29  ;;  %4308 = vmatprep.subr.bf16.mxu1 %v4779_v30  ;;  %v4833_v28 = vld [vmem:[#allocation6 + $0x2b8] sm:$0xff]   ;;  %v4834_v29 = vld [vmem:[#allocation6 + $0x340] sm:$0xff]  }
 0x48c   :  { %v4835_v30 = vld [vmem:[#allocation6 + $0x3c0] sm:$0xff]  }
 0x48e   :  { %4287 = vmatpush3.bf16.msra.mxu0 %v4780_v31  ;;  %4309 = vmatpush3.bf16.msra.mxu1 %v4781_v32  ;;  %v4836_v31 = vld [vmem:[#allocation6 + $0x300] sm:$0xff]  }
 0x48f   :  { %4288 = vmatprep.subr.bf16.mxu0 %v4782_v33  ;;  %4310 = vmatprep.subr.bf16.mxu1 %v4783_v34  ;;  %v4837_v32 = vld [vmem:[#allocation6 + $0x380] sm:$0xff]   ;;  %v4838_v33 = vld [vmem:[#allocation6 + $0x348] sm:$0xff]  }
 0x490   :  { %v4839_v34 = vld [vmem:[#allocation6 + $0x3c8] sm:$0xff]  }
 0x492   :  { %4289 = vmatpush3.bf16.msra.mxu0 %v4784_v35  ;;  %4311 = vmatpush3.bf16.msra.mxu1 %v4785_v36  ;;  %v4840_v35 = vld [vmem:[#allocation6 + $0x308] sm:$0xff]  }
 0x493   :  { %4290 = vmatprep.subr.bf16.mxu0 %v4786_v37  ;;  %4312 = vmatprep.subr.bf16.mxu1 %v4787_v38  ;;  %v4841_v36 = vld [vmem:[#allocation6 + $0x388] sm:$0xff]   ;;  %v4842_v37 = vld [vmem:[#allocation6 + $0x350] sm:$0xff]  }
 0x494   :  { %v4843_v38 = vld [vmem:[#allocation6 + $0x3d0] sm:$0xff]  }
 0x496   :  { %4291 = vmatpush3.bf16.msra.mxu0 %v4788_v39  ;;  %4313 = vmatpush3.bf16.msra.mxu1 %v4789_v40  ;;  %v4844_v39 = vld [vmem:[#allocation6 + $0x310] sm:$0xff]  }
 0x497   :  { %4292 = vmatprep.subr.bf16.mxu0 %v4790_v41  ;;  %4314 = vmatprep.subr.bf16.mxu1 %v4791_v42  ;;  %v4845_v40 = vld [vmem:[#allocation6 + $0x390] sm:$0xff]   ;;  %v4846_v41 = vld [vmem:[#allocation6 + $0x358] sm:$0xff]  }
 0x498   :  { %v4847_v42 = vld [vmem:[#allocation6 + $0x3d8] sm:$0xff]  }
 0x49a   :  { %4293 = vmatpush3.bf16.msra.mxu0 %v4792_v43  ;;  %4315 = vmatpush3.bf16.msra.mxu1 %v4793_v44  ;;  %v4848_v43 = vld [vmem:[#allocation6 + $0x318] sm:$0xff]  }
 0x49b   :  { %4294 = vmatprep.subr.bf16.mxu0 %v4794_v45  ;;  %4316 = vmatprep.subr.bf16.mxu1 %v4795_v46  ;;  %v4849_v44 = vld [vmem:[#allocation6 + $0x398] sm:$0xff]   ;;  %v4850_v45 = vld [vmem:[#allocation6 + $0x360] sm:$0xff]  }
 0x49c   :  { %v4851_v46 = vld [vmem:[#allocation6 + $0x3e0] sm:$0xff]  }
 0x49e   :  { %4295 = vmatpush3.bf16.msra.mxu0 %v4796_v51  ;;  %4317 = vmatpush3.bf16.msra.mxu1 %v4797_v52  ;;  %v4852_v51 = vld [vmem:[#allocation6 + $0x320] sm:$0xff]  }
 0x49f   :  { %4296 = vmatprep.subr.bf16.mxu0 %v4798_v53  ;;  %4318 = vmatprep.subr.bf16.mxu1 %v4799_v56  ;;  %v4853_v52 = vld [vmem:[#allocation6 + $0x3a0] sm:$0xff]   ;;  %v4854_v53 = vld [vmem:[#allocation6 + $0x368] sm:$0xff]  }
 0x4a0   :  { %v4855_v56 = vld [vmem:[#allocation6 + $0x3e8] sm:$0xff]  }
 0x4a2   :  { %4297 = vmatpush3.bf16.msra.mxu0 %v4800_v57  ;;  %4319 = vmatpush3.bf16.msra.mxu1 %v4801_v58  ;;  %v4856_v57 = vld [vmem:[#allocation6 + $0x328] sm:$0xff]  }
 0x4a3   :  { %4326 = vmatprep.subr.bf16.mxu0 %v4802_v61  ;;  %4348 = vmatprep.subr.bf16.mxu1 %v4803_v62  ;;  %v4857_v58 = vld [vmem:[#allocation6 + $0x3a8] sm:$0xff]   ;;  %v4858_v61 = vld [vmem:[#allocation6 + $0x370] sm:$0xff]  }
 0x4a4   :  { %v4859_v62 = vld [vmem:[#allocation6 + $0x3f0] sm:$0xff]  }
 0x4a5   :  { %936 = vmatmul.mubr.bf16.vlgmr.msra.gmra.mrb[8].mxu0 %v5386_v23  ;;  %976 = vmatmul.mubr.bf16.vlgmr.msra.gmra.mrb[8].mxu1 %v5390_v54 }
 0x4a6   :  { %4327 = vmatpush3.bf16.msra.mxu0 %v4804_v63  ;;  %1273 = vmatprep.mubr.bf16.mxu0 %v5388_v24  ;;  %v4860_v63 = vld [vmem:[#allocation6 + $0x330] sm:$0xff]  }
 0x4a7   :  { %4349 = vmatpush3.bf16.msra.mxu1 %v4805_v0  ;;  %1313 = vmatprep.mubr.bf16.mxu1 %v5392_v59  ;;  %v4861_v0 = vld [vmem:[#allocation6 + $0x3b0] sm:$0xff]  }
 0x4a8   :  { %4328 = vmatprep.subr.bf16.mxu0 %v4806_v1  ;;  %4350 = vmatprep.subr.bf16.mxu1 %v4807_v2  ;;  %v4862_v1 = vld [vmem:[#allocation6 + $0x378] sm:$0xff]  }
 0x4a9   :  { %v4863_v2 = vld [vmem:[#allocation6 + $0x3f8] sm:$0xff]  }
 0x4aa   :  { %4329 = vmatpush3.bf16.msra.mxu0 %v4808_v3  ;;  %v4864_v3 = vld [vmem:[#allocation6 + $0x338] sm:$0xff]  }
 0x4ab   :  { %4351 = vmatpush3.bf16.msra.mxu1 %v4809_v4  ;;  %4330 = vmatprep.subr.bf16.mxu0 %v4810_v5  ;;  %v4865_v4 = vld [vmem:[#allocation6 + $0x3b8] sm:$0xff]   ;;  %v4866_v5 = vld [vmem:[#allocation6 + $0x440] sm:$0xff]  }
 0x4ac   :  { %4352 = vmatprep.subr.bf16.mxu1 %v4811_v6  ;;  %v4867_v6 = vld [vmem:[#allocation6 + $0x4c0] sm:$0xff]  }
 0x4ae   :  { %4331 = vmatpush3.bf16.msra.mxu0 %v4812_v7  ;;  %v4868_v7 = vld [vmem:[#allocation6 + $0x400] sm:$0xff]  }
 0x4af   :  { %4353 = vmatpush3.bf16.msra.mxu1 %v4813_v8  ;;  %4332 = vmatprep.subr.bf16.mxu0 %v4814_v9  ;;  %v4869_v8 = vld [vmem:[#allocation6 + $0x480] sm:$0xff]   ;;  %v4870_v9 = vld [vmem:[#allocation6 + $0x448] sm:$0xff]  }
 0x4b0   :  { %4354 = vmatprep.subr.bf16.mxu1 %v4815_v10  ;;  %v4871_v10 = vld [vmem:[#allocation6 + $0x4c8] sm:$0xff]  }
 0x4b2   :  { %4333 = vmatpush3.bf16.msra.mxu0 %v4816_v11  ;;  %v4872_v11 = vld [vmem:[#allocation6 + $0x408] sm:$0xff]  }
 0x4b3   :  { %4355 = vmatpush3.bf16.msra.mxu1 %v4817_v12  ;;  %4334 = vmatprep.subr.bf16.mxu0 %v4818_v13  ;;  %v4873_v12 = vld [vmem:[#allocation6 + $0x488] sm:$0xff]   ;;  %v4874_v13 = vld [vmem:[#allocation6 + $0x450] sm:$0xff]  }
 0x4b4   :  { %4356 = vmatprep.subr.bf16.mxu1 %v4819_v14  ;;  %v4875_v14 = vld [vmem:[#allocation6 + $0x4d0] sm:$0xff]  }
 0x4b6   :  { %4335 = vmatpush3.bf16.msra.mxu0 %v4820_v15  ;;  %v4876_v15 = vld [vmem:[#allocation6 + $0x410] sm:$0xff]  }
 0x4b7   :  { %4357 = vmatpush3.bf16.msra.mxu1 %v4821_v16  ;;  %4336 = vmatprep.subr.bf16.mxu0 %v4822_v17  ;;  %v4877_v16 = vld [vmem:[#allocation6 + $0x490] sm:$0xff]   ;;  %v4878_v17 = vld [vmem:[#allocation6 + $0x458] sm:$0xff]  }
 0x4b8   :  { %4358 = vmatprep.subr.bf16.mxu1 %v4823_v18  ;;  %v4879_v18 = vld [vmem:[#allocation6 + $0x4d8] sm:$0xff]  }
 0x4ba   :  { %4337 = vmatpush3.bf16.msra.mxu0 %v4824_v19  ;;  %v4880_v19 = vld [vmem:[#allocation6 + $0x418] sm:$0xff]  }
 0x4bb   :  { %4359 = vmatpush3.bf16.msra.mxu1 %v4825_v20  ;;  %4338 = vmatprep.subr.bf16.mxu0 %v4826_v21  ;;  %v4881_v20 = vld [vmem:[#allocation6 + $0x498] sm:$0xff]   ;;  %v4882_v21 = vld [vmem:[#allocation6 + $0x460] sm:$0xff]  }
 0x4bc   :  { %4360 = vmatprep.subr.bf16.mxu1 %v4827_v22  ;;  %v4883_v22 = vld [vmem:[#allocation6 + $0x4e0] sm:$0xff]  }
 0x4be   :  { %4339 = vmatpush3.bf16.msra.mxu0 %v4828_v55  ;;  %v4884_v55 = vld [vmem:[#allocation6 + $0x420] sm:$0xff]  }
 0x4bf   :  { %4361 = vmatpush3.bf16.msra.mxu1 %v4829_v25  ;;  %4340 = vmatprep.subr.bf16.mxu0 %v4830_v60  ;;  %v4885_v25 = vld [vmem:[#allocation6 + $0x4a0] sm:$0xff]   ;;  %v4886_v60 = vld [vmem:[#allocation6 + $0x468] sm:$0xff]  }
 0x4c0   :  { %4362 = vmatprep.subr.bf16.mxu1 %v4831_v26  ;;  %v4887_v26 = vld [vmem:[#allocation6 + $0x4e8] sm:$0xff]  }
 0x4c2   :  { %4341 = vmatpush3.bf16.msra.mxu0 %v4832_v27  ;;  %v4888_v27 = vld [vmem:[#allocation6 + $0x428] sm:$0xff]  }
 0x4c3   :  { %4363 = vmatpush3.bf16.msra.mxu1 %v4833_v28  ;;  %4370 = vmatprep.subr.bf16.mxu0 %v4834_v29  ;;  %v4889_v28 = vld [vmem:[#allocation6 + $0x4a8] sm:$0xff]   ;;  %v4890_v29 = vld [vmem:[#allocation6 + $0x470] sm:$0xff]  }
 0x4c4   :  { %4392 = vmatprep.subr.bf16.mxu1 %v4835_v30  ;;  %v4891_v30 = vld [vmem:[#allocation6 + $0x4f0] sm:$0xff]  }
 0x4c5   :  { %1274 = vmatmul.mubr.bf16.vlgmr.msra.gmra.mrb[12].mxu0 %v5386_v23 }
 0x4c6   :  { %1314 = vmatmul.mubr.bf16.vlgmr.msra.gmra.mrb[12].mxu1 %v5390_v54  ;;  %4371 = vmatpush3.bf16.msra.mxu0 %v4836_v31  ;;  %v4892_v31 = vld [vmem:[#allocation6 + $0x430] sm:$0xff]  }
 0x4c7   :  { %1611 = vmatprep.mubr.bf16.mxu0 %v5388_v24  ;;  %4393 = vmatpush3.bf16.msra.mxu1 %v4837_v32  ;;  %v4893_v32 = vld [vmem:[#allocation6 + $0x4b0] sm:$0xff]  }
 0x4c8   :  { %1651 = vmatprep.mubr.bf16.mxu1 %v5392_v59  ;;  %4372 = vmatprep.subr.bf16.mxu0 %v4838_v33  ;;  %v4894_v33 = vld [vmem:[#allocation6 + $0x478] sm:$0xff]  }
 0x4c9   :  { %4394 = vmatprep.subr.bf16.mxu1 %v4839_v34  ;;  %v4895_v34 = vld [vmem:[#allocation6 + $0x4f8] sm:$0xff]  }
 0x4ca   :  { %4373 = vmatpush3.bf16.msra.mxu0 %v4840_v35  ;;  %v4896_v35 = vld [vmem:[#allocation6 + $0x438] sm:$0xff]  }
 0x4cb   :  { %4395 = vmatpush3.bf16.msra.mxu1 %v4841_v36  ;;  %4374 = vmatprep.subr.bf16.mxu0 %v4842_v37  ;;  %v4897_v36 = vld [vmem:[#allocation6 + $0x4b8] sm:$0xff]   ;;  %v4898_v37 = vld [vmem:[#allocation6 + $0x540] sm:$0xff]  }
 0x4cc   :  { %4396 = vmatprep.subr.bf16.mxu1 %v4843_v38  ;;  %v4899_v38 = vld [vmem:[#allocation6 + $0x5c0] sm:$0xff]  }
 0x4ce   :  { %4375 = vmatpush3.bf16.msra.mxu0 %v4844_v39  ;;  %v4900_v39 = vld [vmem:[#allocation6 + $0x500] sm:$0xff]  }
 0x4cf   :  { %4397 = vmatpush3.bf16.msra.mxu1 %v4845_v40  ;;  %4376 = vmatprep.subr.bf16.mxu0 %v4846_v41  ;;  %v4901_v40 = vld [vmem:[#allocation6 + $0x580] sm:$0xff]   ;;  %v4902_v41 = vld [vmem:[#allocation6 + $0x548] sm:$0xff]  }
 0x4d0   :  { %4398 = vmatprep.subr.bf16.mxu1 %v4847_v42  ;;  %v4903_v42 = vld [vmem:[#allocation6 + $0x5c8] sm:$0xff]  }
 0x4d2   :  { %4377 = vmatpush3.bf16.msra.mxu0 %v4848_v43  ;;  %v4904_v43 = vld [vmem:[#allocation6 + $0x508] sm:$0xff]  }
 0x4d3   :  { %4399 = vmatpush3.bf16.msra.mxu1 %v4849_v44  ;;  %4378 = vmatprep.subr.bf16.mxu0 %v4850_v45  ;;  %v4905_v44 = vld [vmem:[#allocation6 + $0x588] sm:$0xff]   ;;  %v4906_v45 = vld [vmem:[#allocation6 + $0x550] sm:$0xff]  }
 0x4d4   :  { %4400 = vmatprep.subr.bf16.mxu1 %v4851_v46  ;;  %v4907_v46 = vld [vmem:[#allocation6 + $0x5d0] sm:$0xff]  }
 0x4d6   :  { %4379 = vmatpush3.bf16.msra.mxu0 %v4852_v51  ;;  %v4908_v51 = vld [vmem:[#allocation6 + $0x510] sm:$0xff]  }
 0x4d7   :  { %4401 = vmatpush3.bf16.msra.mxu1 %v4853_v52  ;;  %4380 = vmatprep.subr.bf16.mxu0 %v4854_v53  ;;  %v4909_v52 = vld [vmem:[#allocation6 + $0x590] sm:$0xff]   ;;  %v4910_v53 = vld [vmem:[#allocation6 + $0x558] sm:$0xff]  }
 0x4d8   :  { %4402 = vmatprep.subr.bf16.mxu1 %v4855_v56  ;;  %v4911_v56 = vld [vmem:[#allocation6 + $0x5d8] sm:$0xff]  }
 0x4da   :  { %4381 = vmatpush3.bf16.msra.mxu0 %v4856_v57  ;;  %v4912_v57 = vld [vmem:[#allocation6 + $0x518] sm:$0xff]  }
 0x4db   :  { %4403 = vmatpush3.bf16.msra.mxu1 %v4857_v58  ;;  %4382 = vmatprep.subr.bf16.mxu0 %v4858_v61  ;;  %v4913_v58 = vld [vmem:[#allocation6 + $0x598] sm:$0xff]   ;;  %v4914_v61 = vld [vmem:[#allocation6 + $0x560] sm:$0xff]  }
 0x4dc   :  { %4404 = vmatprep.subr.bf16.mxu1 %v4859_v62  ;;  %v4915_v62 = vld [vmem:[#allocation6 + $0x5e0] sm:$0xff]  }
 0x4de   :  { %4383 = vmatpush3.bf16.msra.mxu0 %v4860_v63  ;;  %v4916_v63 = vld [vmem:[#allocation6 + $0x520] sm:$0xff]  }
 0x4df   :  { %4405 = vmatpush3.bf16.msra.mxu1 %v4861_v0  ;;  %4384 = vmatprep.subr.bf16.mxu0 %v4862_v1  ;;  %v4917_v0 = vld [vmem:[#allocation6 + $0x5a0] sm:$0xff]   ;;  %v4918_v1 = vld [vmem:[#allocation6 + $0x568] sm:$0xff]  }
 0x4e0   :  { %4406 = vmatprep.subr.bf16.mxu1 %v4863_v2  ;;  %v4919_v2 = vld [vmem:[#allocation6 + $0x5e8] sm:$0xff]  }
 0x4e2   :  { %4385 = vmatpush3.bf16.msra.mxu0 %v4864_v3  ;;  %v4920_v3 = vld [vmem:[#allocation6 + $0x528] sm:$0xff]  }
 0x4e3   :  { %4407 = vmatpush3.bf16.msra.mxu1 %v4865_v4  ;;  %4414 = vmatprep.subr.bf16.mxu0 %v4866_v5  ;;  %v4921_v4 = vld [vmem:[#allocation6 + $0x5a8] sm:$0xff]   ;;  %v4922_v5 = vld [vmem:[#allocation6 + $0x570] sm:$0xff]  }
 0x4e4   :  { %4436 = vmatprep.subr.bf16.mxu1 %v4867_v6  ;;  %v4923_v6 = vld [vmem:[#allocation6 + $0x5f0] sm:$0xff]  }
 0x4e5   :  { %1612 = vmatmul.mubr.bf16.vlgmr.msra.gmra.mrb[16].mxu0 %v5386_v23 }
 0x4e6   :  { %1652 = vmatmul.mubr.bf16.vlgmr.msra.gmra.mrb[16].mxu1 %v5390_v54  ;;  %4415 = vmatpush3.bf16.msra.mxu0 %v4868_v7  ;;  %v4924_v7 = vld [vmem:[#allocation6 + $0x530] sm:$0xff]  }
 0x4e7   :  { %1949 = vmatprep.mubr.bf16.mxu0 %v5388_v24  ;;  %4437 = vmatpush3.bf16.msra.mxu1 %v4869_v8  ;;  %v4925_v8 = vld [vmem:[#allocation6 + $0x5b0] sm:$0xff]  }
 0x4e8   :  { %1989 = vmatprep.mubr.bf16.mxu1 %v5392_v59  ;;  %4416 = vmatprep.subr.bf16.mxu0 %v4870_v9  ;;  %v4926_v9 = vld [vmem:[#allocation6 + $0x578] sm:$0xff]  }
 0x4e9   :  { %4438 = vmatprep.subr.bf16.mxu1 %v4871_v10  ;;  %v4927_v10 = vld [vmem:[#allocation6 + $0x5f8] sm:$0xff]  }
 0x4ea   :  { %4417 = vmatpush3.bf16.msra.mxu0 %v4872_v11  ;;  %v4928_v11 = vld [vmem:[#allocation6 + $0x538] sm:$0xff]  }
 0x4eb   :  { %4439 = vmatpush3.bf16.msra.mxu1 %v4873_v12  ;;  %4418 = vmatprep.subr.bf16.mxu0 %v4874_v13  ;;  %v4929_v12 = vld [vmem:[#allocation6 + $0x5b8] sm:$0xff]   ;;  %v4930_v13 = vld [vmem:[#allocation6 + $0x640] sm:$0xff]  }
 0x4ec   :  { %4440 = vmatprep.subr.bf16.mxu1 %v4875_v14  ;;  %v4931_v14 = vld [vmem:[#allocation6 + $0x6c0] sm:$0xff]  }
 0x4ee   :  { %4419 = vmatpush3.bf16.msra.mxu0 %v4876_v15  ;;  %v4932_v15 = vld [vmem:[#allocation6 + $0x600] sm:$0xff]  }
 0x4ef   :  { %4441 = vmatpush3.bf16.msra.mxu1 %v4877_v16  ;;  %4420 = vmatprep.subr.bf16.mxu0 %v4878_v17  ;;  %v4933_v16 = vld [vmem:[#allocation6 + $0x680] sm:$0xff]   ;;  %v4934_v17 = vld [vmem:[#allocation6 + $0x648] sm:$0xff]  }
 0x4f0   :  { %4442 = vmatprep.subr.bf16.mxu1 %v4879_v18  ;;  %v4935_v18 = vld [vmem:[#allocation6 + $0x6c8] sm:$0xff]  }
 0x4f2   :  { %4421 = vmatpush3.bf16.msra.mxu0 %v4880_v19  ;;  %v4936_v19 = vld [vmem:[#allocation6 + $0x608] sm:$0xff]  }
 0x4f3   :  { %4443 = vmatpush3.bf16.msra.mxu1 %v4881_v20  ;;  %4422 = vmatprep.subr.bf16.mxu0 %v4882_v21  ;;  %v4937_v20 = vld [vmem:[#allocation6 + $0x688] sm:$0xff]   ;;  %v4938_v21 = vld [vmem:[#allocation6 + $0x650] sm:$0xff]  }
 0x4f4   :  { %4444 = vmatprep.subr.bf16.mxu1 %v4883_v22  ;;  %v4939_v22 = vld [vmem:[#allocation6 + $0x6d0] sm:$0xff]  }
 0x4f6   :  { %4423 = vmatpush3.bf16.msra.mxu0 %v4884_v55  ;;  %v4940_v55 = vld [vmem:[#allocation6 + $0x610] sm:$0xff]  }
 0x4f7   :  { %4445 = vmatpush3.bf16.msra.mxu1 %v4885_v25  ;;  %4424 = vmatprep.subr.bf16.mxu0 %v4886_v60  ;;  %v4941_v25 = vld [vmem:[#allocation6 + $0x690] sm:$0xff]   ;;  %v4942_v60 = vld [vmem:[#allocation6 + $0x658] sm:$0xff]  }
 0x4f8   :  { %4446 = vmatprep.subr.bf16.mxu1 %v4887_v26  ;;  %v4943_v26 = vld [vmem:[#allocation6 + $0x6d8] sm:$0xff]  }
 0x4fa   :  { %4425 = vmatpush3.bf16.msra.mxu0 %v4888_v27  ;;  %v4944_v27 = vld [vmem:[#allocation6 + $0x618] sm:$0xff]  }
 0x4fb   :  { %4447 = vmatpush3.bf16.msra.mxu1 %v4889_v28  ;;  %4426 = vmatprep.subr.bf16.mxu0 %v4890_v29  ;;  %v4945_v28 = vld [vmem:[#allocation6 + $0x698] sm:$0xff]   ;;  %v4946_v29 = vld [vmem:[#allocation6 + $0x660] sm:$0xff]  }
 0x4fc   :  { %4448 = vmatprep.subr.bf16.mxu1 %v4891_v30  ;;  %v4947_v30 = vld [vmem:[#allocation6 + $0x6e0] sm:$0xff]  }
 0x4fe   :  { %4427 = vmatpush3.bf16.msra.mxu0 %v4892_v31  ;;  %v4948_v31 = vld [vmem:[#allocation6 + $0x620] sm:$0xff]  }
 0x4ff   :  { %4449 = vmatpush3.bf16.msra.mxu1 %v4893_v32  ;;  %4428 = vmatprep.subr.bf16.mxu0 %v4894_v33  ;;  %v4949_v32 = vld [vmem:[#allocation6 + $0x6a0] sm:$0xff]   ;;  %v4950_v33 = vld [vmem:[#allocation6 + $0x668] sm:$0xff]  }
 0x500   :  { %4450 = vmatprep.subr.bf16.mxu1 %v4895_v34  ;;  %v4951_v34 = vld [vmem:[#allocation6 + $0x6e8] sm:$0xff]  }
 0x502   :  { %4429 = vmatpush3.bf16.msra.mxu0 %v4896_v35  ;;  %v4952_v35 = vld [vmem:[#allocation6 + $0x628] sm:$0xff]  }
 0x503   :  { %4451 = vmatpush3.bf16.msra.mxu1 %v4897_v36  ;;  %4458 = vmatprep.subr.bf16.mxu0 %v4898_v37  ;;  %v4953_v36 = vld [vmem:[#allocation6 + $0x6a8] sm:$0xff]   ;;  %v4954_v37 = vld [vmem:[#allocation6 + $0x670] sm:$0xff]  }
 0x504   :  { %4480 = vmatprep.subr.bf16.mxu1 %v4899_v38  ;;  %v4955_v38 = vld [vmem:[#allocation6 + $0x6f0] sm:$0xff]  }
 0x505   :  { %1950 = vmatmul.mubr.bf16.vlgmr.msra.gmra.mrb[20].mxu0 %v5386_v23 }
 0x506   :  { %1990 = vmatmul.mubr.bf16.vlgmr.msra.gmra.mrb[20].mxu1 %v5390_v54  ;;  %4459 = vmatpush3.bf16.msra.mxu0 %v4900_v39  ;;  %v4956_v39 = vld [vmem:[#allocation6 + $0x630] sm:$0xff]  }
 0x507   :  { %2287 = vmatprep.mubr.bf16.mxu0 %v5388_v24  ;;  %4481 = vmatpush3.bf16.msra.mxu1 %v4901_v40  ;;  %v4957_v40 = vld [vmem:[#allocation6 + $0x6b0] sm:$0xff]  }
 0x508   :  { %2327 = vmatprep.mubr.bf16.mxu1 %v5392_v59  ;;  %4460 = vmatprep.subr.bf16.mxu0 %v4902_v41  ;;  %v4958_v41 = vld [vmem:[#allocation6 + $0x678] sm:$0xff]  }
 0x509   :  { %4482 = vmatprep.subr.bf16.mxu1 %v4903_v42  ;;  %v4959_v42 = vld [vmem:[#allocation6 + $0x6f8] sm:$0xff]  }
 0x50a   :  { %4461 = vmatpush3.bf16.msra.mxu0 %v4904_v43  ;;  %v4960_v43 = vld [vmem:[#allocation6 + $0x638] sm:$0xff]  }
 0x50b   :  { %4483 = vmatpush3.bf16.msra.mxu1 %v4905_v44  ;;  %4462 = vmatprep.subr.bf16.mxu0 %v4906_v45  ;;  %v4961_v44 = vld [vmem:[#allocation6 + $0x6b8] sm:$0xff]   ;;  %v4962_v45 = vld [vmem:[#allocation6 + $0x740] sm:$0xff]  }
 0x50c   :  { %4484 = vmatprep.subr.bf16.mxu1 %v4907_v46  ;;  %v4963_v46 = vld [vmem:[#allocation6 + $0x7c0] sm:$0xff]  }
 0x50e   :  { %4463 = vmatpush3.bf16.msra.mxu0 %v4908_v51  ;;  %v4964_v51 = vld [vmem:[#allocation6 + $0x700] sm:$0xff]  }
 0x50f   :  { %4485 = vmatpush3.bf16.msra.mxu1 %v4909_v52  ;;  %4464 = vmatprep.subr.bf16.mxu0 %v4910_v53  ;;  %v4965_v52 = vld [vmem:[#allocation6 + $0x780] sm:$0xff]   ;;  %v4966_v53 = vld [vmem:[#allocation6 + $0x748] sm:$0xff]  }
 0x510   :  { %4486 = vmatprep.subr.bf16.mxu1 %v4911_v56  ;;  %v4967_v56 = vld [vmem:[#allocation6 + $0x7c8] sm:$0xff]  }
 0x512   :  { %4465 = vmatpush3.bf16.msra.mxu0 %v4912_v57  ;;  %v4968_v57 = vld [vmem:[#allocation6 + $0x708] sm:$0xff]  }
 0x513   :  { %4487 = vmatpush3.bf16.msra.mxu1 %v4913_v58  ;;  %4466 = vmatprep.subr.bf16.mxu0 %v4914_v61  ;;  %v4969_v58 = vld [vmem:[#allocation6 + $0x788] sm:$0xff]   ;;  %v4970_v61 = vld [vmem:[#allocation6 + $0x750] sm:$0xff]  }
 0x514   :  { %4488 = vmatprep.subr.bf16.mxu1 %v4915_v62  ;;  %v4971_v62 = vld [vmem:[#allocation6 + $0x7d0] sm:$0xff]  }
 0x516   :  { %4467 = vmatpush3.bf16.msra.mxu0 %v4916_v63  ;;  %v4972_v63 = vld [vmem:[#allocation6 + $0x710] sm:$0xff]  }
 0x517   :  { %4489 = vmatpush3.bf16.msra.mxu1 %v4917_v0  ;;  %4468 = vmatprep.subr.bf16.mxu0 %v4918_v1  ;;  %v4973_v0 = vld [vmem:[#allocation6 + $0x790] sm:$0xff]   ;;  %v4974_v1 = vld [vmem:[#allocation6 + $0x758] sm:$0xff]  }
 0x518   :  { %4490 = vmatprep.subr.bf16.mxu1 %v4919_v2  ;;  %v4975_v2 = vld [vmem:[#allocation6 + $0x7d8] sm:$0xff]  }
 0x51a   :  { %4469 = vmatpush3.bf16.msra.mxu0 %v4920_v3  ;;  %v4976_v3 = vld [vmem:[#allocation6 + $0x718] sm:$0xff]  }
 0x51b   :  { %4491 = vmatpush3.bf16.msra.mxu1 %v4921_v4  ;;  %4470 = vmatprep.subr.bf16.mxu0 %v4922_v5  ;;  %v4977_v4 = vld [vmem:[#allocation6 + $0x798] sm:$0xff]   ;;  %v4978_v5 = vld [vmem:[#allocation6 + $0x760] sm:$0xff]  }
 0x51c   :  { %4492 = vmatprep.subr.bf16.mxu1 %v4923_v6  ;;  %v4979_v6 = vld [vmem:[#allocation6 + $0x7e0] sm:$0xff]  }
 0x51e   :  { %4471 = vmatpush3.bf16.msra.mxu0 %v4924_v7  ;;  %v4980_v7 = vld [vmem:[#allocation6 + $0x720] sm:$0xff]  }
 0x51f   :  { %4493 = vmatpush3.bf16.msra.mxu1 %v4925_v8  ;;  %4472 = vmatprep.subr.bf16.mxu0 %v4926_v9  ;;  %v4981_v8 = vld [vmem:[#allocation6 + $0x7a0] sm:$0xff]   ;;  %v4982_v9 = vld [vmem:[#allocation6 + $0x768] sm:$0xff]  }
 0x520   :  { %4494 = vmatprep.subr.bf16.mxu1 %v4927_v10  ;;  %v4983_v10 = vld [vmem:[#allocation6 + $0x7e8] sm:$0xff]  }
 0x522   :  { %4473 = vmatpush3.bf16.msra.mxu0 %v4928_v11  ;;  %v4984_v11 = vld [vmem:[#allocation6 + $0x728] sm:$0xff]  }
 0x523   :  { %4495 = vmatpush3.bf16.msra.mxu1 %v4929_v12  ;;  %4502 = vmatprep.subr.bf16.mxu0 %v4930_v13  ;;  %v4985_v12 = vld [vmem:[#allocation6 + $0x7a8] sm:$0xff]   ;;  %v4986_v13 = vld [vmem:[#allocation6 + $0x770] sm:$0xff]  }
 0x524   :  { %4524 = vmatprep.subr.bf16.mxu1 %v4931_v14 }
 0x525   :  { %2288 = vmatmul.mubr.bf16.vlgmr.msra.gmra.mrb[24].mxu0 %v5386_v23 }
 0x526   :  { %2328 = vmatmul.mubr.bf16.vlgmr.msra.gmra.mrb[24].mxu1 %v5390_v54  ;;  %4503 = vmatpush3.bf16.msra.mxu0 %v4932_v15 }
 0x527   :  { %2625 = vmatprep.mubr.bf16.mxu0 %v5388_v24  ;;  %4525 = vmatpush3.bf16.msra.mxu1 %v4933_v16  ;;  %v4987_v16 = vld [vmem:[#allocation6 + $0x7f0] sm:$0xff]  }
 0x528   :  { %2665 = vmatprep.mubr.bf16.mxu1 %v5392_v59  ;;  %4504 = vmatprep.subr.bf16.mxu0 %v4934_v17 }
 0x529   :  { %4526 = vmatprep.subr.bf16.mxu1 %v4935_v18 }
 0x52a   :  { %4505 = vmatpush3.bf16.msra.mxu0 %v4936_v19 }
 0x52b   :  { %4527 = vmatpush3.bf16.msra.mxu1 %v4937_v20  ;;  %4506 = vmatprep.subr.bf16.mxu0 %v4938_v21 }
 0x52c   :  { %4528 = vmatprep.subr.bf16.mxu1 %v4939_v22 }
 0x52e   :  { %4507 = vmatpush3.bf16.msra.mxu0 %v4940_v55  ;;  %v4988_v55 = vld [vmem:[#allocation6 + $0x730] sm:$0xff]  }
 0x52f   :  { %4529 = vmatpush3.bf16.msra.mxu1 %v4941_v25  ;;  %4508 = vmatprep.subr.bf16.mxu0 %v4942_v60 }
 0x530   :  { %4530 = vmatprep.subr.bf16.mxu1 %v4943_v26  ;;  %v4989_v26 = vld [vmem:[#allocation6 + $0x7b0] sm:$0xff]  }
 0x532   :  { %4509 = vmatpush3.bf16.msra.mxu0 %v4944_v27  ;;  %v4990_v27 = vld [vmem:[#allocation6 + $0x778] sm:$0xff]  }
 0x533   :  { %4531 = vmatpush3.bf16.msra.mxu1 %v4945_v28  ;;  %4510 = vmatprep.subr.bf16.mxu0 %v4946_v29  ;;  %v4991_v29 = vld [vmem:[#allocation6 + $0x7f8] sm:$0xff]  }
 0x534   :  { %4532 = vmatprep.subr.bf16.mxu1 %v4947_v30  ;;  %v4992_v30 = vld [vmem:[#allocation6 + $0x738] sm:$0xff]  }
 0x536   :  { %4511 = vmatpush3.bf16.msra.mxu0 %v4948_v31  ;;  %v4993_v31 = vld [vmem:[#allocation6 + $0x7b8] sm:$0xff]  }
 0x537   :  { %4533 = vmatpush3.bf16.msra.mxu1 %v4949_v32  ;;  %4512 = vmatprep.subr.bf16.mxu0 %v4950_v33  ;;  %v4994_v32 = vld [vmem:[#allocation6 + $0x840] sm:$0xff]  }
 0x538   :  { %4534 = vmatprep.subr.bf16.mxu1 %v4951_v34  ;;  %v4995_v33 = vld [vmem:[#allocation6 + $0x8c0] sm:$0xff]  }
 0x539   :  { %v4996_v34 = vld [vmem:[#allocation6 + $0x800] sm:$0xff]  }
 0x53a   :  { %4513 = vmatpush3.bf16.msra.mxu0 %v4952_v35  ;;  %v4997_v35 = vld [vmem:[#allocation6 + $0x880] sm:$0xff]  }
 0x53b   :  { %4535 = vmatpush3.bf16.msra.mxu1 %v4953_v36  ;;  %4514 = vmatprep.subr.bf16.mxu0 %v4954_v37  ;;  %v4998_v36 = vld [vmem:[#allocation6 + $0x848] sm:$0xff]  }
 0x53c   :  { %4536 = vmatprep.subr.bf16.mxu1 %v4955_v38  ;;  %v4999_v37 = vld [vmem:[#allocation6 + $0x8c8] sm:$0xff]  }
 0x53d   :  { %v5000_v38 = vld [vmem:[#allocation6 + $0x808] sm:$0xff]  }
 0x53e   :  { %4515 = vmatpush3.bf16.msra.mxu0 %v4956_v39  ;;  %v5001_v39 = vld [vmem:[#allocation6 + $0x888] sm:$0xff]  }
 0x53f   :  { %4537 = vmatpush3.bf16.msra.mxu1 %v4957_v40  ;;  %4516 = vmatprep.subr.bf16.mxu0 %v4958_v41  ;;  %v5002_v40 = vld [vmem:[#allocation6 + $0x850] sm:$0xff]  }
 0x540   :  { %4538 = vmatprep.subr.bf16.mxu1 %v4959_v42  ;;  %v5003_v41 = vld [vmem:[#allocation6 + $0x8d0] sm:$0xff]  }
 0x541   :  { %v5004_v42 = vld [vmem:[#allocation6 + $0x810] sm:$0xff]  }
 0x542   :  { %4517 = vmatpush3.bf16.msra.mxu0 %v4960_v43  ;;  %v5005_v43 = vld [vmem:[#allocation6 + $0x890] sm:$0xff]  }
 0x543   :  { %4539 = vmatpush3.bf16.msra.mxu1 %v4961_v44  ;;  %4546 = vmatprep.subr.bf16.mxu0 %v4962_v45  ;;  %v5006_v44 = vld [vmem:[#allocation6 + $0x858] sm:$0xff]  }
 0x544   :  { %4568 = vmatprep.subr.bf16.mxu1 %v4963_v46  ;;  %v5007_v45 = vld [vmem:[#allocation6 + $0x8d8] sm:$0xff]  }
 0x545   :  { %2626 = vmatmul.mubr.bf16.vlgmr.msra.gmra.mrb[28].mxu0 %v5386_v23  ;;  %v5008_v46 = vld [vmem:[#allocation6 + $0x818] sm:$0xff]  }
 0x546   :  { %2666 = vmatmul.mubr.bf16.vlgmr.msra.gmra.mrb[28].mxu1 %v5390_v54  ;;  %4547 = vmatpush3.bf16.msra.mxu0 %v4964_v51  ;;  %v5010_v51 = vld [vmem:[#allocation6 + $0x860] sm:$0xff]  }
 0x547   :  { %2963 = vmatprep.mubr.bf16.mxu0 %v5388_v24  ;;  %4569 = vmatpush3.bf16.msra.mxu1 %v4965_v52  ;;  %v5011_v52 = vld [vmem:[#allocation6 + $0x8e0] sm:$0xff]  }
 0x548   :  { %3003 = vmatprep.mubr.bf16.mxu1 %v5392_v59  ;;  %4548 = vmatprep.subr.bf16.mxu0 %v4966_v53  ;;  %v5013_v53 = vld [vmem:[#allocation6 + $0x8a0] sm:$0xff]  }
 0x549   :  { %4570 = vmatprep.subr.bf16.mxu1 %v4967_v56  ;;  %v5014_v56 = vld [vmem:[#allocation6 + $0x868] sm:$0xff]  }
 0x54a   :  { %4549 = vmatpush3.bf16.msra.mxu0 %v4968_v57  ;;  %v5015_v57 = vld [vmem:[#allocation6 + $0x8e8] sm:$0xff]  }
 0x54b   :  { %4571 = vmatpush3.bf16.msra.mxu1 %v4969_v58  ;;  %4550 = vmatprep.subr.bf16.mxu0 %v4970_v61  ;;  %v5016_v58 = vld [vmem:[#allocation6 + $0x828] sm:$0xff]  }
 0x54c   :  { %4572 = vmatprep.subr.bf16.mxu1 %v4971_v62  ;;  %v5017_v61 = vld [vmem:[#allocation6 + $0x8a8] sm:$0xff]   ;;  %v5018_v62 = vld [vmem:[#allocation6 + $0x870] sm:$0xff]  }
 0x54e   :  { %4551 = vmatpush3.bf16.msra.mxu0 %v4972_v63 }
 0x54f   :  { %4573 = vmatpush3.bf16.msra.mxu1 %v4973_v0  ;;  %4552 = vmatprep.subr.bf16.mxu0 %v4974_v1  ;;  %v5019_v1 = vld [vmem:[#allocation6 + $0x8f0] sm:$0xff]  }
 0x550   :  { %4574 = vmatprep.subr.bf16.mxu1 %v4975_v2 }
 0x552   :  { %4553 = vmatpush3.bf16.msra.mxu0 %v4976_v3 }
 0x553   :  { %4575 = vmatpush3.bf16.msra.mxu1 %v4977_v4  ;;  %4554 = vmatprep.subr.bf16.mxu0 %v4978_v5 }
 0x554   :  { %4576 = vmatprep.subr.bf16.mxu1 %v4979_v6 }
 0x556   :  { %4555 = vmatpush3.bf16.msra.mxu0 %v4980_v7 }
 0x557   :  { %4577 = vmatpush3.bf16.msra.mxu1 %v4981_v8  ;;  %4556 = vmatprep.subr.bf16.mxu0 %v4982_v9  ;;  %v5020_v8 = vld [vmem:[#allocation6 + $0x830] sm:$0xff]  }
 0x558   :  { %v4254_v14 = vpop.f32.mrb[4].mxu0  ;;  %v4276_v15 = vpop.f32.mrb[4].mxu1  ;;  %4578 = vmatprep.subr.bf16.mxu1 %v4983_v10 }
 0x559   :  { %v4255_v17 = vpop.f32.mrb[5].mxu0  ;;  %v4277_v18 = vpop.f32.mrb[5].mxu1 }
 0x55a   :  { %v4256_v19 = vadd.f32 %v4255_v17, %v4254_v14  ;;  %v4278_v20 = vadd.f32 %v4277_v18, %v4276_v15  ;;  %4557 = vmatpush3.bf16.msra.mxu0 %v4984_v11  ;;  %v4257_v21 = vpop.f32.mrb[6].mxu0  ;;  %v4279_v22 = vpop.f32.mrb[6].mxu1  ;;  %v5021_v11 = vld [vmem:[#allocation6 + $0x8b0] sm:$0xff]   ;;  %v5023_v14 = vld [vmem:[#allocation6 + $0x8f8] sm:$0xff]   ;;  %v5026_v17 = vld [vmem:[#allocation6 + $0x440] sm:$0xff]  }
 0x55b   :  { %4579 = vmatpush3.bf16.msra.mxu1 %v4985_v12  ;;  %v4258_v25 = vpop.f32.mrb[7].mxu0  ;;  %v4280_v60 = vpop.f32.mrb[7].mxu1  ;;  %4558 = vmatprep.subr.bf16.mxu0 %v4986_v13  ;;  %v5022_v12 = vld [vmem:[#allocation6 + $0x878] sm:$0xff]   ;;  %v5027_v18 = vld [vmem:[#allocation6 + $0x400] sm:$0xff]   ;;  %v5029_v21 = vld [vmem:[#allocation6 + $0x408] sm:$0xff]  }
 0x55c   :  { %v640_v28 = vadd.f32 %v4278_v20, %v4256_v19  ;;  %4580 = vmatprep.subr.bf16.mxu1 %v4987_v16  ;;  %v5024_v15 = vld [vmem:[#allocation6 + $0x838] sm:$0xff]   ;;  %v5223_v19 = vmov 0.0   ;;  %v5028_v20 = vld [vmem:[#allocation6 + $0x448] sm:$0xff]   ;;  %v5030_v22 = vld [vmem:[#allocation6 + $0x450] sm:$0xff]  }
 0x55d   :  { %v5025_v16 = vld [vmem:[#allocation6 + $0x8b8] sm:$0xff]  }
 0x55e   :  { %645 = vst [vmem:[#allocation2] sm:$0xf] %v640_v28  ;;  %4559 = vmatpush3.bf16.msra.mxu0 %v4988_v55  ;;  %v5031_v55 = vld [vmem:[#allocation6 + $0x410] sm:$0xff]   ;;  %v5032_v25 = vld [vmem:[#allocation6 + $0x458] sm:$0xff]  }
 0x55f   :  { %4581 = vmatpush3.bf16.msra.mxu1 %v4989_v26  ;;  %4560 = vmatprep.subr.bf16.mxu0 %v4990_v27  ;;  %v5033_v60 = vld [vmem:[#allocation6 + $0x418] sm:$0xff]   ;;  %v5034_v26 = vld [vmem:[#allocation6 + $0x460] sm:$0xff]  }
 0x560   :  { %4582 = vmatprep.subr.bf16.mxu1 %v4991_v29  ;;  %v5035_v27 = vld [vmem:[#allocation6 + $0x420] sm:$0xff]  }
 0x562   :  { %4561 = vmatpush3.bf16.msra.mxu0 %v4992_v30 }
 0x563   :  { %4583 = vmatpush3.bf16.msra.mxu1 %v4993_v31  ;;  %4590 = vmatprep.subr.bf16.mxu0 %v4994_v32 }
 0x564   :  { %4612 = vmatprep.subr.bf16.mxu1 %v4995_v33 }
 0x565   :  { %2964 = vmatmul.mubr.bf16.vlgmr.msra.gmra.mrb[32].mxu0 %v5386_v23 }
 0x566   :  { %3004 = vmatmul.mubr.bf16.vlgmr.msra.gmra.mrb[32].mxu1 %v5390_v54  ;;  %4591 = vmatpush3.bf16.msra.mxu0 %v4996_v34 }
 0x567   :  { %3301 = vmatprep.mubr.bf16.mxu0 %v5388_v24  ;;  %4613 = vmatpush3.bf16.msra.mxu1 %v4997_v35  ;;  %v5009_v24 = vld [vmem:[#allocation6 + $0x898] sm:$0xff]  }
 0x568   :  { %3341 = vmatprep.mubr.bf16.mxu1 %v5392_v59  ;;  %4592 = vmatprep.subr.bf16.mxu0 %v4998_v36  ;;  %v5012_v59 = vld [vmem:[#allocation6 + $0x820] sm:$0xff]  }
 0x569   :  { %4614 = vmatprep.subr.bf16.mxu1 %v4999_v37  ;;  %v5039_v37 = vld [vmem:[#allocation6 + $0x430] sm:$0xff]  }
 0x56a   :  { %4593 = vmatpush3.bf16.msra.mxu0 %v5000_v38 }
 0x56b   :  { %4615 = vmatpush3.bf16.msra.mxu1 %v5001_v39  ;;  %4594 = vmatprep.subr.bf16.mxu0 %v5002_v40  ;;  %v5040_v39 = vld [vmem:[#allocation6 + $0x478] sm:$0xff]  }
 0x56c   :  { %4616 = vmatprep.subr.bf16.mxu1 %v5003_v41  ;;  %v5041_v41 = vld [vmem:[#allocation6 + $0x438] sm:$0xff]  }
 0x56e   :  { %4595 = vmatpush3.bf16.msra.mxu0 %v5004_v42 }
 0x56f   :  { %4617 = vmatpush3.bf16.msra.mxu1 %v5005_v43  ;;  %4596 = vmatprep.subr.bf16.mxu0 %v5006_v44 }
 0x570   :  { %4618 = vmatprep.subr.bf16.mxu1 %v5007_v45 }
 0x572   :  { %4597 = vmatpush3.bf16.msra.mxu0 %v5008_v46 }
 0x573   :  { %4619 = vmatpush3.bf16.msra.mxu1 %v5009_v24  ;;  %4598 = vmatprep.subr.bf16.mxu0 %v5010_v51 }
 0x574   :  { %4620 = vmatprep.subr.bf16.mxu1 %v5011_v52 }
 0x576   :  { %4599 = vmatpush3.bf16.msra.mxu0 %v5012_v59 }
 0x577   :  { %4621 = vmatpush3.bf16.msra.mxu1 %v5013_v53  ;;  %4600 = vmatprep.subr.bf16.mxu0 %v5014_v56 }
 0x578   :  { %v4298_v63 = vpop.f32.mrb[8].mxu0  ;;  %v4320_v0 = vpop.f32.mrb[8].mxu1  ;;  %4622 = vmatprep.subr.bf16.mxu1 %v5015_v57 }
 0x579   :  { %v4299_v2 = vpop.f32.mrb[9].mxu0  ;;  %v4321_v3 = vpop.f32.mrb[9].mxu1 }
 0x57a   :  { %v4300_v4 = vadd.f32 %v4299_v2, %v4298_v63  ;;  %v4322_v5 = vadd.f32 %v4321_v3, %v4320_v0  ;;  %v4301_v6 = vpop.f32.mrb[10].mxu0  ;;  %v4323_v7 = vpop.f32.mrb[10].mxu1  ;;  %4601 = vmatpush3.bf16.msra.mxu0 %v5016_v58 }
 0x57b   :  { %4623 = vmatpush3.bf16.msra.mxu1 %v5017_v61  ;;  %v4302_v9 = vpop.f32.mrb[11].mxu0  ;;  %v4324_v10 = vpop.f32.mrb[11].mxu1  ;;  %4602 = vmatprep.subr.bf16.mxu0 %v5018_v62 }
 0x57c   :  { %v978_v13 = vadd.f32 %v4322_v5, %v4300_v4  ;;  %4624 = vmatprep.subr.bf16.mxu1 %v5019_v1 }
 0x57e   :  { %983 = vst [vmem:[#allocation2 + $0x4] sm:$0xf] %v978_v13  ;;  %4603 = vmatpush3.bf16.msra.mxu0 %v5020_v8 }
 0x57f   :  { %4625 = vmatpush3.bf16.msra.mxu1 %v5021_v11  ;;  %4604 = vmatprep.subr.bf16.mxu0 %v5022_v12 }
 0x580   :  { %4626 = vmatprep.subr.bf16.mxu1 %v5023_v14 }
 0x582   :  { %4605 = vmatpush3.bf16.msra.mxu0 %v5024_v15 }
 0x583   :  { %4627 = vmatpush3.bf16.msra.mxu1 %v5025_v16  ;;  %4686 = vmatprep.subr.bf16.mxu0 %v5223_v19 }
 0x584   :  { %4638 = vmatprep.subr.bf16.mxu1 %v5026_v17 }
 0x585   :  { %3302 = vmatmul.mubr.bf16.vlgmr.msra.gmra.mrb[36].mxu0 %v5386_v23  ;;  %v5036_v23 = vld [vmem:[#allocation6 + $0x468] sm:$0xff]   ;;  %v3351_v57 = vld [vmem:[#allocation2] sm:$0xff] }
 0x586   :  { %3342 = vmatmul.mubr.bf16.vlgmr.msra.gmra.mrb[36].mxu1 %v5390_v54  ;;  %v5037_v54 = vld [vmem:[#allocation6 + $0x428] sm:$0xff]   ;;  %4692 = vmatprep.mubr.msk.bf16.mxu0 %vm5224_vm2, %v5223_v19 }
 0x587   :  { %4639 = vmatpush3.bf16.msra.mxu1 %v5027_v18  ;;  %3730 = vmatprep.mubr.bf16.mxu1 %v5331_v47  ;;  %v5038_v47 = vld [vmem:[#allocation6 + $0x470] sm:$0xff]  }
 0x588   :  { %4640 = vmatprep.subr.bf16.mxu1 %v5028_v20 }
 0x58b   :  { %4641 = vmatpush3.bf16.msra.mxu1 %v5029_v21 }
 0x58c   :  { %4642 = vmatprep.subr.bf16.mxu1 %v5030_v22 }
 0x58f   :  { %4643 = vmatpush3.bf16.msra.mxu1 %v5031_v55 }
 0x590   :  { %4644 = vmatprep.subr.bf16.mxu1 %v5032_v25 }
 0x593   :  { %4645 = vmatpush3.bf16.msra.mxu1 %v5033_v60 }
 0x594   :  { %4646 = vmatprep.subr.bf16.mxu1 %v5034_v26 }
 0x597   :  { %4647 = vmatpush3.bf16.msra.mxu1 %v5035_v27 }
 0x598   :  { %v4342_v28 = vpop.f32.mrb[12].mxu0  ;;  %4648 = vmatprep.subr.bf16.mxu1 %v5036_v23 }
 0x599   :  { %v4364_v29 = vpop.f32.mrb[12].mxu1  ;;  %v4343_v30 = vpop.f32.mrb[13].mxu0 }
 0x59a   :  { %v4344_v31 = vadd.f32 %v4343_v30, %v4342_v28  ;;  %v4365_v32 = vpop.f32.mrb[13].mxu1  ;;  %v4345_v33 = vpop.f32.mrb[14].mxu0 }
 0x59b   :  { %v4366_v34 = vadd.f32 %v4365_v32, %v4364_v29  ;;  %v4367_v35 = vpop.f32.mrb[14].mxu1  ;;  %4649 = vmatpush3.bf16.msra.mxu1 %v5037_v54  ;;  %v4346_v36 = vpop.f32.mrb[15].mxu0 }
 0x59c   :  { %v4368_v38 = vpop.f32.mrb[15].mxu1  ;;  %4650 = vmatprep.subr.bf16.mxu1 %v5038_v47 }
 0x59d   :  { %v1316_v40 = vadd.f32 %v4366_v34, %v4344_v31 }
 0x59f   :  { %1321 = vst [vmem:[#allocation2 + $0x8] sm:$0xf] %v1316_v40  ;;  %4651 = vmatpush3.bf16.msra.mxu1 %v5039_v37 }
 0x5a0   :  { %4652 = vmatprep.subr.bf16.mxu1 %v5040_v39 }
 0x5a3   :  { %4653 = vmatpush3.bf16.msra.mxu1 %v5041_v41 }
 0x5a4   :  { %4696 = vmatprep.subr.bf16.mxu1 %v5223_v19 }
 0x5a6   :  { %3731 = vmatmul.mubr.bf16.vlgmr.msra.gmra.mrb[40].mxu1 %v5335_v49 }
 0x5a7   :  { %4698 = vmatprep.mubr.msk.bf16.mxu1 %vm5224_vm2, %v5223_v19 }
 0x5b8   :  { %v4386_v42 = vpop.f32.mrb[16].mxu0 }
 0x5b9   :  { %v4408_v43 = vpop.f32.mrb[16].mxu1  ;;  %v4387_v44 = vpop.f32.mrb[17].mxu0 }
 0x5ba   :  { %v4388_v45 = vadd.f32 %v4387_v44, %v4386_v42  ;;  %v4409_v46 = vpop.f32.mrb[17].mxu1  ;;  %v4389_v24 = vpop.f32.mrb[18].mxu0 }
 0x5bb   :  { %v4410_v51 = vadd.f32 %v4409_v46, %v4408_v43  ;;  %v4411_v52 = vpop.f32.mrb[18].mxu1  ;;  %v4390_v59 = vpop.f32.mrb[19].mxu0 }
 0x5bc   :  { %v4412_v53 = vpop.f32.mrb[19].mxu1 }
 0x5bd   :  { %v1654_v56 = vadd.f32 %v4410_v51, %v4388_v45 }
 0x5bf   :  { %1659 = vst [vmem:[#allocation2 + $0xc] sm:$0xf] %v1654_v56 }
 0x5c6   :  { %v3352_v58 = vld [vmem:[#allocation2 + $0x8] sm:$0xff] }
 0x5c7   :  { %v3356_v61 = vpack.c.bf16 %v3352_v58, %v3351_v57 }
 0x5c9   :  { %4687 = vmatpush3.bf16.msra.mxu0 %v3356_v61  ;;  %v5042_v61 = vld [vmem:[#allocation6 + $0x4c0] sm:$0xff]  }
 0x5ca   :  { %4688 = vmatprep.subr.bf16.mxu0 %v5223_v19 }
 0x5d8   :  { %v4430_v62 = vpop.f32.mrb[20].mxu0 }
 0x5d9   :  { %v4452_v49 = vpop.f32.mrb[20].mxu1  ;;  %v4431_v63 = vpop.f32.mrb[21].mxu0 }
 0x5da   :  { %v4432_v0 = vadd.f32 %v4431_v63, %v4430_v62  ;;  %v4453_v1 = vpop.f32.mrb[21].mxu1  ;;  %v4433_v2 = vpop.f32.mrb[22].mxu0  ;;  %v5043_v63 = vld [vmem:[#allocation6 + $0x480] sm:$0xff]  }
 0x5db   :  { %v4454_v3 = vadd.f32 %v4453_v1, %v4452_v49  ;;  %v4455_v4 = vpop.f32.mrb[22].mxu1  ;;  %v4434_v5 = vpop.f32.mrb[23].mxu0  ;;  %v3350_v49 = vld [vmem:[#allocation11] sm:$0x3]  ;;  %v5046_v2 = vld [vmem:[#allocation6 + $0x4d0] sm:$0xff]  }
 0x5dc   :  { %v4456_v6 = vpop.f32.mrb[23].mxu1  ;;  %v5045_v1 = vld [vmem:[#allocation6 + $0x488] sm:$0xff]   ;;  %v5048_v4 = vld [vmem:[#allocation6 + $0x4d8] sm:$0xff]  }
 0x5dd   :  { %v1992_v7 = vadd.f32 %v4454_v3, %v4432_v0  ;;  %v5044_v0 = vld [vmem:[#allocation6 + $0x4c8] sm:$0xff]   ;;  %v5047_v3 = vld [vmem:[#allocation6 + $0x490] sm:$0xff]   ;;  %v5049_v5 = vld [vmem:[#allocation6 + $0x498] sm:$0xff]  }
 0x5de   :  { %v5050_v6 = vld [vmem:[#allocation6 + $0x4e0] sm:$0xff]  }
 0x5df   :  { %1997 = vst [vmem:[#allocation2 + $0x10] sm:$0xf] %v1992_v7 }
 0x5f8   :  { %v4474_v8 = vpop.f32.mrb[24].mxu0 }
 0x5f9   :  { %v4496_v9 = vpop.f32.mrb[24].mxu1  ;;  %v4475_v10 = vpop.f32.mrb[25].mxu0 }
 0x5fa   :  { %v4476_v11 = vadd.f32 %v4475_v10, %v4474_v8  ;;  %v4497_v12 = vpop.f32.mrb[25].mxu1  ;;  %v4477_v13 = vpop.f32.mrb[26].mxu0 }
 0x5fb   :  { %v4498_v14 = vadd.f32 %v4497_v12, %v4496_v9  ;;  %v4499_v15 = vpop.f32.mrb[26].mxu1  ;;  %v4478_v16 = vpop.f32.mrb[27].mxu0  ;;  %v5051_v9 = vld [vmem:[#allocation6 + $0x4a0] sm:$0xff]   ;;  %v5052_v12 = vld [vmem:[#allocation6 + $0x4e8] sm:$0xff]  }
 0x5fc   :  { %v4500_v17 = vpop.f32.mrb[27].mxu1  ;;  %v5053_v13 = vld [vmem:[#allocation6 + $0x4a8] sm:$0xff]   ;;  %v5055_v15 = vld [vmem:[#allocation6 + $0x4b0] sm:$0xff]   ;;  %v5056_v16 = vld [vmem:[#allocation6 + $0x4f8] sm:$0xff]  }
 0x5fd   :  { %v2330_v18 = vadd.f32 %v4498_v14, %v4476_v11  ;;  %v5054_v14 = vld [vmem:[#allocation6 + $0x4f0] sm:$0xff]   ;;  %v5057_v17 = vld [vmem:[#allocation6 + $0x4b8] sm:$0xff]  }
 0x5ff   :  { %2335 = vst [vmem:[#allocation2 + $0x14] sm:$0xf] %v2330_v18 }
 0x606   :  { %v3353_v39 = vld [vmem:[#allocation2 + $0x10] sm:$0xff] }
 0x618   :  { %v4518_v20 = vpop.f32.mrb[28].mxu0 }
 0x619   :  { %v4540_v21 = vpop.f32.mrb[28].mxu1  ;;  %v4519_v22 = vpop.f32.mrb[29].mxu0 }
 0x61a   :  { %v4520_v55 = vadd.f32 %v4519_v22, %v4518_v20  ;;  %v4541_v25 = vpop.f32.mrb[29].mxu1  ;;  %v4521_v60 = vpop.f32.mrb[30].mxu0 }
 0x61b   :  { %v4542_v26 = vadd.f32 %v4541_v25, %v4540_v21  ;;  %v4543_v27 = vpop.f32.mrb[30].mxu1  ;;  %v4522_v23 = vpop.f32.mrb[31].mxu0 }
 0x61c   :  { %v4544_v54 = vpop.f32.mrb[31].mxu1 }
 0x61d   :  { %v2668_v28 = vadd.f32 %v4542_v26, %v4520_v55  ;;  %v5225_v26 = vmov 4  }
 0x61e   :  { %4735 = vset.pattern.permute.xlu1 %v5225_v26 }
 0x61f   :  { %2673 = vst [vmem:[#allocation2 + $0x18] sm:$0xf] %v2668_v28 }
 0x638   :  { %v4562_v47 = vpop.f32.mrb[32].mxu0 }
 0x639   :  { %v4584_v29 = vpop.f32.mrb[32].mxu1  ;;  %v4563_v30 = vpop.f32.mrb[33].mxu0 }
 0x63a   :  { %v4564_v31 = vadd.f32 %v4563_v30, %v4562_v47  ;;  %v4585_v32 = vpop.f32.mrb[33].mxu1  ;;  %v4565_v33 = vpop.f32.mrb[34].mxu0 }
 0x63b   :  { %v4586_v34 = vadd.f32 %v4585_v32, %v4584_v29  ;;  %v4587_v35 = vpop.f32.mrb[34].mxu1  ;;  %v4566_v36 = vpop.f32.mrb[35].mxu0 }
 0x63c   :  { %v4588_v37 = vpop.f32.mrb[35].mxu1 }
 0x63d   :  { %v3006_v38 = vadd.f32 %v4586_v34, %v4564_v31 }
 0x63f   :  { %3011 = vst [vmem:[#allocation2 + $0x1c] sm:$0xf] %v3006_v38  ;;  %v5226_v38 = vmov 5  }
 0x640   :  { %4737 = vset.pattern.permute.xlu0 %v5226_v38 }
 0x646   :  { %v3354_v40 = vld [vmem:[#allocation2 + $0x18] sm:$0xff] }
 0x647   :  { %v3357_v41 = vpack.c.bf16 %v3354_v40, %v3353_v39  ;;  %v5070_v40 = vld [vmem:[#allocation8] sm:$0xf] }
 0x649   :  { %4689 = vmatpush3.bf16.msra.mxu0 %v3357_v41 }
 0x64a   :  { %4690 = vmatprep.subr.bf16.mxu0 %v5223_v19 }
 0x658   :  { %v4606_v42 = vpop.f32.mrb[36].mxu0 }
 0x659   :  { %v4628_v43 = vpop.f32.mrb[36].mxu1  ;;  %v4607_v44 = vpop.f32.mrb[37].mxu0 }
 0x65a   :  { %v4608_v45 = vadd.f32 %v4607_v44, %v4606_v42  ;;  %v4629_v46 = vpop.f32.mrb[37].mxu1  ;;  %v4609_v24 = vpop.f32.mrb[38].mxu0 }
 0x65b   :  { %v4630_v51 = vadd.f32 %v4629_v46, %v4628_v43  ;;  %v4631_v52 = vpop.f32.mrb[38].mxu1  ;;  %v4610_v59 = vpop.f32.mrb[39].mxu0  ;;  %v5058_v43 = vld [vmem:[%s5476_s6] sm:$0xff]  }
 0x65c   :  { %v4632_v53 = vpop.f32.mrb[39].mxu1 }
 0x65d   :  { %v3344_v56 = vadd.f32 %v4630_v51, %v4608_v45 }
 0x65f   :  { %3349 = vst [vmem:[#allocation2 + $0x20] sm:$0xf] %v3344_v56 }
 0x666   :  { %v3355_v57 = vld [vmem:[#allocation2 + $0x20] sm:$0xf] }
 0x667   :  { %v3358_v58 = vpack.c.bf16 %v3355_v57, %v3355_v57  ;;  %v5059_v57 = vld [vmem:[%s5475_s5] sm:$0xff]  }
 0x669   :  { %v3365_v62 = vsel %vm3363_vm3, %v3358_v58, 0 }
 0x66a   :  { %4691 = vmatpush3.bf16.msra.mxu0 %v3365_v62 }
 0x66b   :  { %4660 = vmatprep.subr.bf16.mxu0 %v5042_v61 }
 0x66d   :  { %4693 = vmatmul.mubr.msk.bf16.vlgmr.msra.gmra.mrb[40].mxu0 %vm3359_vm4, %v3350_v49 }
 0x66e   :  { %4661 = vmatpush3.bf16.msra.mxu0 %v5043_v63  ;;  %3770 = vmatprep.mubr.bf16.mxu0 %v5333_v48 }
 0x66f   :  { %4662 = vmatprep.subr.bf16.mxu0 %v5044_v0 }
 0x672   :  { %4663 = vmatpush3.bf16.msra.mxu0 %v5045_v1 }
 0x673   :  { %4664 = vmatprep.subr.bf16.mxu0 %v5046_v2 }
 0x676   :  { %4665 = vmatpush3.bf16.msra.mxu0 %v5047_v3 }
 0x677   :  { %4666 = vmatprep.subr.bf16.mxu0 %v5048_v4 }
 0x679   :  { %v4654_v7 = vpop.f32.mrb[40].mxu1 }
 0x67a   :  { %v4655_v8 = vpop.f32.mrb[41].mxu1  ;;  %4667 = vmatpush3.bf16.msra.mxu0 %v5049_v5 }
 0x67b   :  { %v4656_v10 = vadd.f32 %v4655_v8, %v4654_v7  ;;  %v4657_v11 = vpop.f32.mrb[42].mxu1  ;;  %4668 = vmatprep.subr.bf16.mxu0 %v5050_v6 }
 0x67c   :  { %v4658_v48 = vpop.f32.mrb[43].mxu1 }
 0x67e   :  { %4669 = vmatpush3.bf16.msra.mxu0 %v5051_v9 }
 0x67f   :  { %4670 = vmatprep.subr.bf16.mxu0 %v5052_v12 }
 0x682   :  { %4671 = vmatpush3.bf16.msra.mxu0 %v5053_v13 }
 0x683   :  { %4672 = vmatprep.subr.bf16.mxu0 %v5054_v14 }
 0x686   :  { %4673 = vmatpush3.bf16.msra.mxu0 %v5055_v15 }
 0x687   :  { %4674 = vmatprep.subr.bf16.mxu0 %v5056_v16 }
 0x68a   :  { %4675 = vmatpush3.bf16.msra.mxu0 %v5057_v17 }
 0x68d   :  { %3771 = vmatmul.mubr.bf16.vlgmr.msra.gmra.mrb[44].mxu0 %v5337_v50 }
 0x740   :  { %v3401_v18 = vpop.f32.mrb[40].mxu0 }
 0x741   :  { %v4694_v20 = vpop.f32.mrb[41].mxu0  ;;  %v3407_v21 = vsel %vm153_vm0, %v3401_v18, 0.0  ;;  %v3412_v22 = vmul.f32 %v3401_v18, %v3401_v18 }
 0x742   :  { %3408 = vadd.xlane.f32.xlu1 %v3407_v21  ;;  %v3404_v55 = vpop.f32.mrb[42].mxu0 }
 0x743   :  { %v4695_v25 = vpop.f32.mrb[43].mxu0  ;;  %v3413_v60 = vsel %vm153_vm0, %v3412_v22, 0.0 }
 0x744   :  { %3414 = vadd.xlane.f32.xlu0 %v3413_v60 }
 0x760   :  { %v4676_v27 = vpop.f32.mrb[44].mxu0 }
 0x761   :  { %v4677_v23 = vpop.f32.mrb[45].mxu0 }
 0x762   :  { %v4678_v54 = vadd.f32 %v4677_v23, %v4676_v27  ;;  %v4679_v28 = vpop.f32.mrb[46].mxu0 }
 0x763   :  { %v4680_v47 = vpop.f32.mrb[47].mxu0 }
 0x764   :  { %v3773_v29 = vadd.f32 %v4678_v54, %v4656_v10 }
 0x766   :  { %v3778_v50 = vpack.c.bf16 %v3773_v29, %v3773_v29 }
 0x768   :  { %v3790_v30 = vsel %vm153_vm0, %v3778_v50, 0 }
 0x769   :  { %4697 = vmatpush3.bf16.msra.mxu1 %v3790_v30 }
 0x76a   :  { %4702 = vmatprep.subr.bf16.mxu1 %v5223_v19 }
 0x76c   :  { %4699 = vmatmul.mubr.msk.bf16.vlgmr.msra.gmra.mrb[44].mxu1 %vm149_vm1, %v5058_v43 }
 0x76d   :  { %4704 = vmatprep.mubr.msk.bf16.mxu1 %vm5224_vm2, %v5223_v19 }
 0x7cf   :  { %v3409_v31 = vpop.xlane.xlu1 %3408 }
 0x7d0   :  { %v3411_v32 = vmul.f32 0.0078125, %v3409_v31 }
 0x7d1   :  { %v3415_v33 = vpop.xlane.xlu0 %3414 }
 0x7d2   :  { %v3417_v34 = vmul.f32 %v3411_v32, %v3411_v32  ;;  %v3416_v35 = vmul.f32 0.0078125, %v3415_v33 }
 0x7d4   :  { %v3418_v36 = vsub.f32 %v3416_v35, %v3417_v34 }
 0x7d6   :  { %v3419_v37 = vadd.f32 1e-05, %v3418_v36 }
 0x7d8   :  { %5064 = vrsqrt.f32 %v3419_v37 }
 0x7e2   :  { %v5065_v39 = vpop.eup %5064 }
 0x7e3   :  { %v3421_v41 = vmul.f32 %v5070_v40, %v5065_v39 }
 0x7e5   :  { %3424 = vperm.xlu1 %4735, %v3421_v41   ;;  %v3428_v42 = vmul.f32 %v3421_v41, %v3411_v32 }
 0x7e7   :  { %3430 = vrot.lane.b32.xlu0 %v3428_v42, %s5220_s4 }
 0x7e9   :  { %4736 = vset.pattern.permute.xlu1 %v5226_v38 }
 0x859   :  { %v3431_v44 = vpop.permute.xlu0 %3430 }
 0x85a   :  { %v3433_v45 = vsub.f32 %v5070_v40, %v3431_v44 }
 0x85c   :  { %3436 = vperm.xlu1 %4736, %v3433_v45  }
 0x864   :  { %v3425_v46 = vpop.permute.xlu1 %3424 }
 0x865   :  { %v3427_v24 = vmul.f32 %v3425_v46, %v3401_v18 }
 0x8db   :  { %v3437_v51 = vpop.permute.xlu1 %3436 }
 0x8dc   :  { %v3439_v52 = vadd.f32 %v3437_v51, %v3427_v24 }
 0x8de   :  { %v3440_v59 = vmax.f32 %v3439_v52, 0.0 }
 0x8e0   :  { %v3441_v53 = vpack.c.bf16 %v3440_v59, %v3440_v59 }
 0x8e2   :  { %v3845_v56 = vsel %vm3363_vm3, %v3441_v53, 0 }
 0x8e3   :  { %4703 = vmatpush3.bf16.msra.mxu1 %v3845_v56 }
 0x8e6   :  { %4705 = vmatmul.mubr.msk.bf16.vlgmr.msra.gmra.mrb[44].mxu1 %vm3840_vm5, %v5059_v57 }
 0x9b9   :  { %v3881_v19 = vpop.f32.mrb[44].mxu1 }
 0x9ba   :  { %3888 = vst [vmem:[#allocation12] sm:$0xff] %v3881_v19  ;;  %v4706_v58 = vpop.f32.mrb[45].mxu1 }
 0x9bb   :  { %v3884_v61 = vpop.f32.mrb[46].mxu1 }
 0x9bc   :  { %3889 = vst [vmem:[#allocation12 + $0x8] sm:$0xff] %v3884_v61  ;;  %v4707_v62 = vpop.f32.mrb[47].mxu1 }
 0x9bd   :  { %5192 = shalt.err (!%p5189_p2)
}
 0x9be   :  { %s5193_s19 = scalar_lea.hbm %s5477_s7, 256 }
 0x9bf   :  { %p5194_p3 = scmp.ne.s32.totalorder %s5477_s7, %s5193_s19  ;;  %p5197_p4 = scmp.lt.u32.totalorder %s5193_s19, %s5477_s7 }
 0x9c1   :  { %p5199_p5 = pnand %p5197_p4, %p5194_p3 }
 0x9c3   :  { %5202 = shalt.err (!%p5199_p5)
}
 0x9c4   :  { %s5228_s24 = smov 128   ;;  %s5229_s26 = smov 8  }
 0x9c5   :  { %3901 = dma.vmem_to_hbm [thread:$0]  %s3896_s15, 256, %s5477_s7, [#allocation5], %s5228_s24, %s5228_s24, %s5229_s26  }
 0x9c6   :  { %5209 = dma.done.wait [#allocation5], 256  }
 0x9c7   :  { %5210 = vsyncadd [#allocation5], 4294967040 }
 0x9c8   :  { %3905 = vsyncpa [#allocation4], 1 }
 0x9c9   :  { %3906 = vsyncpa [#allocation7], 1 }
 0x9ca   :  { %3907 = vsyncpa [#allocation10], 1 }
 0x9cb   :  { %3908 = vsyncpa [#allocation5], 1 }

</bundles_post_ra>
